<compile_context>
chip_gen: v7x
topology: tpu7x:2x2x1
jax: 0.10.0
libtpu: 0.0.40
codegen_flags: <defaults>
</compile_context>

<pallas_src>
import jax
import jax.numpy as jnp
from jax.experimental import pallas as pl
from jax.experimental.pallas import tpu as pltpu


def _pad8(n):
    return ((n + 7) // 8) * 8


# ----------------------------------------------------------------------------------
# Fused Pallas kernel for the whole MultiBlock chain (eval mode, BN folded).
# ----------------------------------------------------------------------------------
def multiblock_pallas(x_nchw, params_list):
    B, Cin0, H, W = x_nchw.shape
    HW = H * W
    NPB = 7  # weight arrays per block: wm, slab, dwm, sw1, sb1, sw2t, w2t

    # 3x3 border-validity masks on the flattened H*W axis (1.0 = valid neighbour).
    py = jnp.arange(HW, dtype=jnp.int32) // W
    px = jnp.arange(HW, dtype=jnp.int32) % W
    mask_rows = []
    for t in range(9):
        dy, dx = t // 3 - 1, t % 3 - 1
        valid = (py + dy >= 0) & (py + dy < H) & (px + dx >= 0) & (px + dx < W)
        mask_rows.append(valid.astype(jnp.float32))
    mask9 = jnp.stack(mask_rows)                                   # (9, HW)

    # --- per-block kernel-layout weights (channel-major) + static metadata ---------
    blocks = []      # static per-block info used while tracing the kernel
    flat_args = []   # flat list of weight arrays fed to pallas_call
    cin = Cin0
    for bi, p in enumerate(params_list):
        C6 = p["w1"].shape[1]
        Cout = p["w2"].shape[1]
        r = p["sw1"].shape[1]
        downsample = bool(p.get("downsample", bi == 0))

        w1t = p["w1"].T.astype(jnp.float32)                        # (C6, cin)
        if downsample:
            # Stack expand + downsample weights: one matmul reads x for both.
            off_res = _pad8(C6)
            rows = off_res + Cout
            wm = jnp.zeros((rows, cin), jnp.float32)
            wm = wm.at[:C6, :].set(w1t)
            wm = wm.at[off_res:off_res + Cout, :].set(p["wd"].T.astype(jnp.float32))
            bpost = p["b2"] + p["bd"]                              # folded project+res bias
        else:
            assert cin == Cout, "identity residual requires in_c == out_c"
            off_res = None
            wm = w1t
            bpost = p["b2"]

        # Pack the per-channel column biases into one 8-aligned slab: fewer DMAs.
        offs = {}
        parts = []
        cur = 0
        for name, v in (("b1", p["b1"]), ("dwb", p["dwb"]),
                        ("sb2", p["sb2"]), ("bpost", bpost)):
            n = int(v.shape[0])
            offs[name] = (cur, n)
            npad = _pad8(n)
            parts.append(jnp.pad(v.astype(jnp.float32), (0, npad - n)))
            cur += npad
        slab = jnp.concatenate(parts).reshape(cur, 1)              # (P, 1)

        # Depthwise tap weights * border masks pre-combined: (9, C6, HW).
        dww = jnp.transpose(p["dww"], (2, 0, 1)).reshape(C6, 9)    # tap t = 3*ky + kx
        dwm = dww.T[:, :, None] * mask9[:, None, :]                # (9, C6, HW)

        sw1 = p["sw1"].astype(jnp.float32)                         # (C6, r)
        sb1 = p["sb1"].reshape(1, r).astype(jnp.float32)           # (1, r)
        sw2t = p["sw2"].T.astype(jnp.float32)                      # (C6, r)
        w2t = p["w2"].T.astype(jnp.float32)                        # (Cout, C6)

        blocks.append(dict(C6=C6, Cout=Cout, r=r, downsample=downsample,
                           off_res=off_res, offs=offs))
        flat_args += [wm, slab, dwm, sw1, sb1, sw2t, w2t]
        cin = Cout
    Cout_last = cin

    # --- fused kernel: whole chain for one sample per grid step --------------------
    def kernel(*refs):
        x_ref = refs[0]
        o_ref = refs[-1]
        wrefs = refs[1:-1]

        h = x_ref[0].astype(jnp.float32)                           # (Cin0, HW) channel-major

        for bi, meta in enumerate(blocks):
            (wm_ref, slab_ref, dwm_ref, sw1_ref,
             sb1_ref, sw2t_ref, w2t_ref) = wrefs[bi * NPB:(bi + 1) * NPB]
            C6 = meta["C6"]
            Cout = meta["Cout"]

            def seg(name, _slab=slab_ref, _offs=meta["offs"]):
                o, n = _offs[name]
                return _slab[pl.ds(o, n), :]                       # static, 8-aligned slice

            # --- conv_1x1_pre (+folded BN) and, for the downsample block, the
            #     residual conv folded into the SAME matmul over x ----------------
            hh = jnp.dot(wm_ref[...], h, preferred_element_type=jnp.float32)
            if meta["downsample"]:
                off_res = meta["off_res"]
                h1 = hh[:C6]                                       # (C6, HW)
                res = hh[off_res:off_res + Cout]                   # (Cout, HW)
            else:
                h1 = hh                                            # (C6, HW)
                res = h                                            # identity residual
            h1 = jnp.maximum(h1 + seg("b1"), 0.0)

            # --- 3x3 depthwise conv (pad=1, +folded BN) + ReLU --------------------
            # Lane rolls on the flattened spatial axis; the tap weight and the
            # border mask are pre-combined in dwm, so each tap is roll+mul+add.
            acc = h1 * dwm_ref[4]                                  # center tap
            for t in range(9):
                if t == 4:
                    continue
                dy, dx = t // 3 - 1, t % 3 - 1
                off = dy * W + dx
                sh = pltpu.roll(h1, shift=(-off) % HW, axis=1)     # sh[p] = h1[p + off]
                acc = acc + sh * dwm_ref[t]
            h2 = jnp.maximum(acc + seg("dwb"), 0.0)                # (C6, HW)

            # --- SEBlock: global avg pool + 2 tiny FCs (VPU) + sigmoid gate,
            #     gate applied to the activations -----------------------------------
            se = jnp.mean(h2, axis=1, keepdims=True)               # (C6, 1)
            z = jnp.sum(sw1_ref[...] * se, axis=0, keepdims=True) + sb1_ref[...]
            z = jnp.maximum(z, 0.0)                                # (1, r)
            gp = jnp.sum(sw2t_ref[...] * z, axis=1, keepdims=True) + seg("sb2")
            g = 1.0 / (1.0 + jnp.exp(-gp))                         # (C6, 1)
            h3 = h2 * g                                            # (C6, HW)

            # --- conv_1x1_post (+folded BN) + residual + folded bias + ReLU --------
            out = jnp.dot(w2t_ref[...], h3, preferred_element_type=jnp.float32)
            h = jnp.maximum(out + res + seg("bpost"), 0.0)         # (Cout, HW)

        o_ref[0] = h.astype(o_ref.dtype)                           # lane-dense store

    # --- pallas_call plumbing -------------------------------------------------------
    in_specs = [pl.BlockSpec((1, Cin0, HW), lambda b: (b, 0, 0))]
    for a in flat_args:
        nd = a.ndim
        in_specs.append(pl.BlockSpec(a.shape, lambda b, nd=nd: (0,) * nd))
    out_spec = pl.BlockSpec((1, Cout_last, HW), lambda b: (b, 0, 0))

    x2 = x_nchw.reshape(B, Cin0, HW).astype(jnp.float32)           # free reshape, no transpose

    out = pl.pallas_call(
        kernel,
        out_shape=jax.ShapeDtypeStruct((B, Cout_last, HW), jnp.float32),
        grid_spec=pltpu.PrefetchScalarGridSpec(
            num_scalar_prefetch=0,
            grid=(B,),                                             # >= 2 steps for B >= 2
            in_specs=in_specs,
            out_specs=out_spec,
        ),
        compiler_params=pltpu.CompilerParams(
            dimension_semantics=("parallel",),
            vmem_limit_bytes=32 * 1024 * 1024,                     # explicit; usage ~2 MB
        ),
    )(x2, *flat_args)
    return out.reshape(B, Cout_last, H, W)                         # free reshape back to NCHW


# ----------------------------------------------------------------------------------
# Pure-JAX reference (same folded-BN math) for validation.
# ----------------------------------------------------------------------------------
def mbconv_ref(x_nchw, p):
    x = jnp.transpose(x_nchw, (0, 2, 3, 1)).astype(jnp.float32)    # NHWC
    B, H, W, Cin = x.shape
    h = jnp.maximum(jnp.einsum("bhwc,cd->bhwd", x, p["w1"]) + p["b1"], 0.0)
    pad = jnp.pad(h, ((0, 0), (1, 1), (1, 1), (0, 0)))
    acc = jnp.zeros_like(h)
    for ky in range(3):
        for kx in range(3):
            acc = acc + pad[:, ky:ky + H, kx:kx + W, :] * p["dww"][ky, kx]
    h2 = jnp.maximum(acc + p["dwb"], 0.0)
    se = jnp.mean(h2, axis=(1, 2))
    z = jnp.maximum(se @ p["sw1"] + p["sb1"], 0.0)
    g = 1.0 / (1.0 + jnp.exp(-(z @ p["sw2"] + p["sb2"])))
    h3 = h2 * g[:, None, None, :]
    out = jnp.einsum("bhwc,cd->bhwd", h3, p["w2"]) + p["b2"]
    if p["downsample"]:
        res = jnp.einsum("bhwc,cd->bhwd", x, p["wd"]) + p["bd"]
    else:
        res = x
    y = jnp.maximum(out + res, 0.0)
    return jnp.transpose(y, (0, 3, 1, 2))


def multiblock_ref(x_nchw, params_list):
    for p in params_list:
        x_nchw = mbconv_ref(x_nchw, p)
    return x_nchw


# ----------------------------------------------------------------------------------
# Parameter construction (eval-mode BN folded into per-channel scale/shift).
# ----------------------------------------------------------------------------------
def init_mbconv_params(key, in_c, out_c, downsample, reduction=16, eps=1e-5):
    C6 = 6 * in_c
    r = max(C6 // reduction, 1)
    ks = iter(jax.random.split(key, 32))

    def nrm(shape, scale=0.2):
        return scale * jax.random.normal(next(ks), shape, jnp.float32)

    def bn_fold(c):
        gamma = 1.0 + 0.1 * jax.random.normal(next(ks), (c,), jnp.float32)
        beta = 0.1 * jax.random.normal(next(ks), (c,), jnp.float32)
        mean = 0.1 * jax.random.normal(next(ks), (c,), jnp.float32)
        var = 1.0 + 0.1 * jax.random.uniform(next(ks), (c,), jnp.float32)
        s = gamma / jnp.sqrt(var + eps)
        t = beta - mean * s
        return s, t

    w1, b1 = nrm((in_c, C6)), nrm((C6,))
    s, t = bn_fold(C6); w1, b1 = w1 * s, b1 * s + t
    dww, dwb = nrm((3, 3, C6)), nrm((C6,))
    s, t = bn_fold(C6); dww, dwb = dww * s, dwb * s + t
    sw1, sb1 = nrm((C6, r)), nrm((r,))
    sw2, sb2 = nrm((r, C6)), nrm((C6,))
    w2, b2 = nrm((C6, out_c)), nrm((out_c,))
    s, t = bn_fold(out_c); w2, b2 = w2 * s, b2 * s + t
    p = dict(w1=w1, b1=b1, dww=dww, dwb=dwb, sw1=sw1, sb1=sb1,
             sw2=sw2, sb2=sb2, w2=w2, b2=b2, downsample=downsample)
    if downsample:
        wd, bd = nrm((in_c, out_c)), nrm((out_c,))
        s, t = bn_fold(out_c); wd, bd = wd * s, bd * s + t
        p["wd"], p["bd"] = wd, bd
    else:
        assert in_c == out_c
    return p


def init_multiblock_params(key, in_c, out_c, reduction=16, num=1):
    keys = jax.random.split(key, num)
    params = []
    for i in range(num):
        if i == 0:
            params.append(init_mbconv_params(keys[i], in_c, out_c, True, reduction))
        else:
            params.append(init_mbconv_params(keys[i], out_c, out_c, False, reduction))
    return params


if __name__ == "__main__":
    B, in_c, out_c, H, W = 2, 4, 8, 16, 16
    num_blocks = 2
    key = jax.random.PRNGKey(0)
    kx, kp = jax.random.split(key)
    x = jax.random.normal(kx, (B, in_c, H, W), jnp.float32)
    params = init_multiblock_params(kp, in_c, out_c, reduction=16, num=num_blocks)

    y = multiblock_pallas(x, params)
    y = jax.block_until_ready(y)

    y_ref = multiblock_ref(x, params)
    assert y.shape == (B, out_c, H, W)
    err = float(jnp.max(jnp.abs(y - y_ref)))
    assert err < 2e-2, f"max abs err {err}"
    print("KERNEL_OK")
</pallas_src>

<mosaic_0001>
module attributes {stable_mosaic.version = 11 : i64} {
  func.func @kernel(%arg0: i32, %arg1: memref<1x4x256xf32, #tpu.memory_space<vmem>>, %arg2: memref<32x4xf32, #tpu.memory_space<vmem>>, %arg3: memref<80x1xf32, #tpu.memory_space<vmem>>, %arg4: memref<9x24x256xf32, #tpu.memory_space<vmem>>, %arg5: memref<24x1xf32, #tpu.memory_space<vmem>>, %arg6: memref<1x1xf32, #tpu.memory_space<vmem>>, %arg7: memref<24x1xf32, #tpu.memory_space<vmem>>, %arg8: memref<8x24xf32, #tpu.memory_space<vmem>>, %arg9: memref<48x8xf32, #tpu.memory_space<vmem>>, %arg10: memref<152x1xf32, #tpu.memory_space<vmem>>, %arg11: memref<9x48x256xf32, #tpu.memory_space<vmem>>, %arg12: memref<48x3xf32, #tpu.memory_space<vmem>>, %arg13: memref<1x3xf32, #tpu.memory_space<vmem>>, %arg14: memref<48x3xf32, #tpu.memory_space<vmem>>, %arg15: memref<8x48xf32, #tpu.memory_space<vmem>>, %arg16: memref<1x8x256xf32, #tpu.memory_space<vmem>>) attributes {dimension_semantics = [#tpu.dimension_semantics<parallel>], iteration_bounds = array<i64: 2>, scalar_prefetch = 0 : i64, scratch_operands = 0 : i64, tpu.core_type = #tpu.core_type<tc>, window_params = [{transform_indices = @transform_0, window_bounds = array<i64: 1, 4, 256>}, {pipeline_mode = #tpu.pipeline_mode<synchronous>, transform_indices = @transform_1, window_bounds = array<i64: 32, 4>}, {pipeline_mode = #tpu.pipeline_mode<synchronous>, transform_indices = @transform_2, window_bounds = array<i64: 80, 1>}, {pipeline_mode = #tpu.pipeline_mode<synchronous>, transform_indices = @transform_3, window_bounds = array<i64: 9, 24, 256>}, {pipeline_mode = #tpu.pipeline_mode<synchronous>, transform_indices = @transform_4, window_bounds = array<i64: 24, 1>}, {pipeline_mode = #tpu.pipeline_mode<synchronous>, transform_indices = @transform_5, window_bounds = array<i64: 1, 1>}, {pipeline_mode = #tpu.pipeline_mode<synchronous>, transform_indices = @transform_6, window_bounds = array<i64: 24, 1>}, {pipeline_mode = #tpu.pipeline_mode<synchronous>, transform_indices = @transform_7, window_bounds = array<i64: 8, 24>}, {pipeline_mode = #tpu.pipeline_mode<synchronous>, transform_indices = @transform_8, window_bounds = array<i64: 48, 8>}, {pipeline_mode = #tpu.pipeline_mode<synchronous>, transform_indices = @transform_9, window_bounds = array<i64: 152, 1>}, {pipeline_mode = #tpu.pipeline_mode<synchronous>, transform_indices = @transform_10, window_bounds = array<i64: 9, 48, 256>}, {pipeline_mode = #tpu.pipeline_mode<synchronous>, transform_indices = @transform_11, window_bounds = array<i64: 48, 3>}, {pipeline_mode = #tpu.pipeline_mode<synchronous>, transform_indices = @transform_12, window_bounds = array<i64: 1, 3>}, {pipeline_mode = #tpu.pipeline_mode<synchronous>, transform_indices = @transform_13, window_bounds = array<i64: 48, 3>}, {pipeline_mode = #tpu.pipeline_mode<synchronous>, transform_indices = @transform_14, window_bounds = array<i64: 8, 48>}, {transform_indices = @transform_15, window_bounds = array<i64: 1, 8, 256>}]} {
    %c0 = arith.constant 0 : index
    %c0_0 = arith.constant 0 : index
    %c0_1 = arith.constant 0 : index
    %0 = vector.load %arg1[%c0, %c0_0, %c0_1] : memref<1x4x256xf32, #tpu.memory_space<vmem>>, vector<1x4x256xf32>
    %1 = vector.shape_cast %0 : vector<1x4x256xf32> to vector<4x256xf32>
    %c0_2 = arith.constant 0 : index
    %c0_3 = arith.constant 0 : index
    %2 = vector.load %arg2[%c0_2, %c0_3] : memref<32x4xf32, #tpu.memory_space<vmem>>, vector<32x4xf32>
    %cst = arith.constant dense<0.000000e+00> : vector<32x256xf32>
    %3 = tpu.matmul %2, %1, %cst {dimension_numbers = #tpu.dot_dimension_numbers<[1], [0], [0], [1], [0, 0, 1, 1], [], []>} : vector<32x4xf32>, vector<4x256xf32>, vector<32x256xf32> -> vector<32x256xf32>
    %4 = vector.extract_strided_slice %3 {offsets = [0, 0], sizes = [24, 256], strides = [1, 1]} : vector<32x256xf32> to vector<24x256xf32>
    %5 = vector.extract_strided_slice %3 {offsets = [24, 0], sizes = [8, 256], strides = [1, 1]} : vector<32x256xf32> to vector<8x256xf32>
    %c0_4 = arith.constant 0 : index
    %c0_5 = arith.constant 0 : index
    %6 = vector.load %arg3[%c0_4, %c0_5] : memref<80x1xf32, #tpu.memory_space<vmem>>, vector<24x1xf32>
    %7 = vector.broadcast %6 : vector<24x1xf32> to vector<24x256xf32>
    %8 = arith.addf %4, %7 : vector<24x256xf32>
    %cst_6 = arith.constant 0.000000e+00 : f32
    %9 = vector.broadcast %cst_6 : f32 to vector<24x256xf32>
    %10 = arith.maximumf %8, %9 : vector<24x256xf32>
    %c4 = arith.constant 4 : index
    %c0_7 = arith.constant 0 : index
    %c0_8 = arith.constant 0 : index
    %11 = vector.load %arg4[%c4, %c0_7, %c0_8] : memref<9x24x256xf32, #tpu.memory_space<vmem>>, vector<1x24x256xf32>
    %12 = vector.shape_cast %11 : vector<1x24x256xf32> to vector<24x256xf32>
    %13 = arith.mulf %10, %12 : vector<24x256xf32>
    %c17_i32 = arith.constant 17 : i32
    %14 = tpu.dynamic_rotate %10 by %c17_i32 dim 1 : vector<24x256xf32>, i32 -> vector<24x256xf32>
    %c0_9 = arith.constant 0 : index
    %c0_10 = arith.constant 0 : index
    %c0_11 = arith.constant 0 : index
    %15 = vector.load %arg4[%c0_9, %c0_10, %c0_11] : memref<9x24x256xf32, #tpu.memory_space<vmem>>, vector<1x24x256xf32>
    %16 = vector.shape_cast %15 : vector<1x24x256xf32> to vector<24x256xf32>
    %17 = arith.mulf %14, %16 : vector<24x256xf32>
    %18 = arith.addf %13, %17 : vector<24x256xf32>
    %c16_i32 = arith.constant 16 : i32
    %19 = tpu.dynamic_rotate %10 by %c16_i32 dim 1 : vector<24x256xf32>, i32 -> vector<24x256xf32>
    %c1 = arith.constant 1 : index
    %c0_12 = arith.constant 0 : index
    %c0_13 = arith.constant 0 : index
    %20 = vector.load %arg4[%c1, %c0_12, %c0_13] : memref<9x24x256xf32, #tpu.memory_space<vmem>>, vector<1x24x256xf32>
    %21 = vector.shape_cast %20 : vector<1x24x256xf32> to vector<24x256xf32>
    %22 = arith.mulf %19, %21 : vector<24x256xf32>
    %23 = arith.addf %18, %22 : vector<24x256xf32>
    %c15_i32 = arith.constant 15 : i32
    %24 = tpu.dynamic_rotate %10 by %c15_i32 dim 1 : vector<24x256xf32>, i32 -> vector<24x256xf32>
    %c2 = arith.constant 2 : index
    %c0_14 = arith.constant 0 : index
    %c0_15 = arith.constant 0 : index
    %25 = vector.load %arg4[%c2, %c0_14, %c0_15] : memref<9x24x256xf32, #tpu.memory_space<vmem>>, vector<1x24x256xf32>
    %26 = vector.shape_cast %25 : vector<1x24x256xf32> to vector<24x256xf32>
    %27 = arith.mulf %24, %26 : vector<24x256xf32>
    %28 = arith.addf %23, %27 : vector<24x256xf32>
    %c1_i32 = arith.constant 1 : i32
    %29 = tpu.dynamic_rotate %10 by %c1_i32 dim 1 : vector<24x256xf32>, i32 -> vector<24x256xf32>
    %c3 = arith.constant 3 : index
    %c0_16 = arith.constant 0 : index
    %c0_17 = arith.constant 0 : index
    %30 = vector.load %arg4[%c3, %c0_16, %c0_17] : memref<9x24x256xf32, #tpu.memory_space<vmem>>, vector<1x24x256xf32>
    %31 = vector.shape_cast %30 : vector<1x24x256xf32> to vector<24x256xf32>
    %32 = arith.mulf %29, %31 : vector<24x256xf32>
    %33 = arith.addf %28, %32 : vector<24x256xf32>
    %c255_i32 = arith.constant 255 : i32
    %34 = tpu.dynamic_rotate %10 by %c255_i32 dim 1 : vector<24x256xf32>, i32 -> vector<24x256xf32>
    %c5 = arith.constant 5 : index
    %c0_18 = arith.constant 0 : index
    %c0_19 = arith.constant 0 : index
    %35 = vector.load %arg4[%c5, %c0_18, %c0_19] : memref<9x24x256xf32, #tpu.memory_space<vmem>>, vector<1x24x256xf32>
    %36 = vector.shape_cast %35 : vector<1x24x256xf32> to vector<24x256xf32>
    %37 = arith.mulf %34, %36 : vector<24x256xf32>
    %38 = arith.addf %33, %37 : vector<24x256xf32>
    %c241_i32 = arith.constant 241 : i32
    %39 = tpu.dynamic_rotate %10 by %c241_i32 dim 1 : vector<24x256xf32>, i32 -> vector<24x256xf32>
    %c6 = arith.constant 6 : index
    %c0_20 = arith.constant 0 : index
    %c0_21 = arith.constant 0 : index
    %40 = vector.load %arg4[%c6, %c0_20, %c0_21] : memref<9x24x256xf32, #tpu.memory_space<vmem>>, vector<1x24x256xf32>
    %41 = vector.shape_cast %40 : vector<1x24x256xf32> to vector<24x256xf32>
    %42 = arith.mulf %39, %41 : vector<24x256xf32>
    %43 = arith.addf %38, %42 : vector<24x256xf32>
    %c240_i32 = arith.constant 240 : i32
    %44 = tpu.dynamic_rotate %10 by %c240_i32 dim 1 : vector<24x256xf32>, i32 -> vector<24x256xf32>
    %c7 = arith.constant 7 : index
    %c0_22 = arith.constant 0 : index
    %c0_23 = arith.constant 0 : index
    %45 = vector.load %arg4[%c7, %c0_22, %c0_23] : memref<9x24x256xf32, #tpu.memory_space<vmem>>, vector<1x24x256xf32>
    %46 = vector.shape_cast %45 : vector<1x24x256xf32> to vector<24x256xf32>
    %47 = arith.mulf %44, %46 : vector<24x256xf32>
    %48 = arith.addf %43, %47 : vector<24x256xf32>
    %c239_i32 = arith.constant 239 : i32
    %49 = tpu.dynamic_rotate %10 by %c239_i32 dim 1 : vector<24x256xf32>, i32 -> vector<24x256xf32>
    %c8 = arith.constant 8 : index
    %c0_24 = arith.constant 0 : index
    %c0_25 = arith.constant 0 : index
    %50 = vector.load %arg4[%c8, %c0_24, %c0_25] : memref<9x24x256xf32, #tpu.memory_space<vmem>>, vector<1x24x256xf32>
    %51 = vector.shape_cast %50 : vector<1x24x256xf32> to vector<24x256xf32>
    %52 = arith.mulf %49, %51 : vector<24x256xf32>
    %53 = arith.addf %48, %52 : vector<24x256xf32>
    %c24 = arith.constant 24 : index
    %c0_26 = arith.constant 0 : index
    %54 = vector.load %arg3[%c24, %c0_26] : memref<80x1xf32, #tpu.memory_space<vmem>>, vector<24x1xf32>
    %55 = vector.broadcast %54 : vector<24x1xf32> to vector<24x256xf32>
    %56 = arith.addf %53, %55 : vector<24x256xf32>
    %cst_27 = arith.constant 0.000000e+00 : f32
    %57 = vector.broadcast %cst_27 : f32 to vector<24x256xf32>
    %58 = arith.maximumf %56, %57 : vector<24x256xf32>
    %cst_28 = arith.constant dense<0.000000e+00> : vector<24xf32>
    %59 = vector.multi_reduction <add>, %58, %cst_28 [1] : vector<24x256xf32> to vector<24xf32>
    %60 = vector.shape_cast %59 : vector<24xf32> to vector<24x1xf32>
    %cst_29 = arith.constant 2.560000e+02 : f32
    %61 = vector.broadcast %cst_29 : f32 to vector<24x1xf32>
    %62 = arith.divf %60, %61 : vector<24x1xf32>
    %c0_30 = arith.constant 0 : index
    %c0_31 = arith.constant 0 : index
    %63 = vector.load %arg5[%c0_30, %c0_31] : memref<24x1xf32, #tpu.memory_space<vmem>>, vector<24x1xf32>
    %64 = arith.mulf %63, %62 : vector<24x1xf32>
    %cst_32 = arith.constant dense<0.000000e+00> : vector<1xf32>
    %65 = vector.multi_reduction <add>, %64, %cst_32 [0] : vector<24x1xf32> to vector<1xf32>
    %66 = vector.shape_cast %65 : vector<1xf32> to vector<1x1xf32>
    %c0_33 = arith.constant 0 : index
    %c0_34 = arith.constant 0 : index
    %67 = vector.load %arg6[%c0_33, %c0_34] : memref<1x1xf32, #tpu.memory_space<vmem>>, vector<1x1xf32>
    %68 = arith.addf %66, %67 : vector<1x1xf32>
    %cst_35 = arith.constant 0.000000e+00 : f32
    %69 = vector.broadcast %cst_35 : f32 to vector<1x1xf32>
    %70 = arith.maximumf %68, %69 : vector<1x1xf32>
    %c0_36 = arith.constant 0 : index
    %c0_37 = arith.constant 0 : index
    %71 = vector.load %arg7[%c0_36, %c0_37] : memref<24x1xf32, #tpu.memory_space<vmem>>, vector<24x1xf32>
    %72 = vector.broadcast %70 : vector<1x1xf32> to vector<24x1xf32>
    %73 = arith.mulf %71, %72 : vector<24x1xf32>
    %cst_38 = arith.constant dense<0.000000e+00> : vector<24xf32>
    %74 = vector.multi_reduction <add>, %73, %cst_38 [1] : vector<24x1xf32> to vector<24xf32>
    %75 = vector.shape_cast %74 : vector<24xf32> to vector<24x1xf32>
    %c48 = arith.constant 48 : index
    %c0_39 = arith.constant 0 : index
    %76 = vector.load %arg3[%c48, %c0_39] : memref<80x1xf32, #tpu.memory_space<vmem>>, vector<24x1xf32>
    %77 = arith.addf %75, %76 : vector<24x1xf32>
    %cst_40 = arith.constant 0.000000e+00 : f32
    %78 = vector.broadcast %cst_40 : f32 to vector<24x1xf32>
    %79 = arith.subf %78, %77 : vector<24x1xf32>
    %80 = math.exp %79 : vector<24x1xf32>
    %cst_41 = arith.constant 1.000000e+00 : f32
    %81 = vector.broadcast %cst_41 : f32 to vector<24x1xf32>
    %82 = arith.addf %81, %80 : vector<24x1xf32>
    %cst_42 = arith.constant 1.000000e+00 : f32
    %83 = vector.broadcast %cst_42 : f32 to vector<24x1xf32>
    %84 = arith.divf %83, %82 : vector<24x1xf32>
    %85 = vector.broadcast %84 : vector<24x1xf32> to vector<24x256xf32>
    %86 = arith.mulf %58, %85 : vector<24x256xf32>
    %c0_43 = arith.constant 0 : index
    %c0_44 = arith.constant 0 : index
    %87 = vector.load %arg8[%c0_43, %c0_44] : memref<8x24xf32, #tpu.memory_space<vmem>>, vector<8x24xf32>
    %cst_45 = arith.constant dense<0.000000e+00> : vector<8x256xf32>
    %88 = tpu.matmul %87, %86, %cst_45 {dimension_numbers = #tpu.dot_dimension_numbers<[1], [0], [0], [1], [0, 0, 1, 1], [], []>} : vector<8x24xf32>, vector<24x256xf32>, vector<8x256xf32> -> vector<8x256xf32>
    %89 = arith.addf %88, %5 : vector<8x256xf32>
    %c72 = arith.constant 72 : index
    %c0_46 = arith.constant 0 : index
    %90 = vector.load %arg3[%c72, %c0_46] : memref<80x1xf32, #tpu.memory_space<vmem>>, vector<8x1xf32>
    %91 = vector.broadcast %90 : vector<8x1xf32> to vector<8x256xf32>
    %92 = arith.addf %89, %91 : vector<8x256xf32>
    %cst_47 = arith.constant 0.000000e+00 : f32
    %93 = vector.broadcast %cst_47 : f32 to vector<8x256xf32>
    %94 = arith.maximumf %92, %93 : vector<8x256xf32>
    %c0_48 = arith.constant 0 : index
    %c0_49 = arith.constant 0 : index
    %95 = vector.load %arg9[%c0_48, %c0_49] : memref<48x8xf32, #tpu.memory_space<vmem>>, vector<48x8xf32>
    %cst_50 = arith.constant dense<0.000000e+00> : vector<48x256xf32>
    %96 = tpu.matmul %95, %94, %cst_50 {dimension_numbers = #tpu.dot_dimension_numbers<[1], [0], [0], [1], [0, 0, 1, 1], [], []>} : vector<48x8xf32>, vector<8x256xf32>, vector<48x256xf32> -> vector<48x256xf32>
    %c0_51 = arith.constant 0 : index
    %c0_52 = arith.constant 0 : index
    %97 = vector.load %arg10[%c0_51, %c0_52] : memref<152x1xf32, #tpu.memory_space<vmem>>, vector<48x1xf32>
    %98 = vector.broadcast %97 : vector<48x1xf32> to vector<48x256xf32>
    %99 = arith.addf %96, %98 : vector<48x256xf32>
    %cst_53 = arith.constant 0.000000e+00 : f32
    %100 = vector.broadcast %cst_53 : f32 to vector<48x256xf32>
    %101 = arith.maximumf %99, %100 : vector<48x256xf32>
    %c4_54 = arith.constant 4 : index
    %c0_55 = arith.constant 0 : index
    %c0_56 = arith.constant 0 : index
    %102 = vector.load %arg11[%c4_54, %c0_55, %c0_56] : memref<9x48x256xf32, #tpu.memory_space<vmem>>, vector<1x48x256xf32>
    %103 = vector.shape_cast %102 : vector<1x48x256xf32> to vector<48x256xf32>
    %104 = arith.mulf %101, %103 : vector<48x256xf32>
    %c17_i32_57 = arith.constant 17 : i32
    %105 = tpu.dynamic_rotate %101 by %c17_i32_57 dim 1 : vector<48x256xf32>, i32 -> vector<48x256xf32>
    %c0_58 = arith.constant 0 : index
    %c0_59 = arith.constant 0 : index
    %c0_60 = arith.constant 0 : index
    %106 = vector.load %arg11[%c0_58, %c0_59, %c0_60] : memref<9x48x256xf32, #tpu.memory_space<vmem>>, vector<1x48x256xf32>
    %107 = vector.shape_cast %106 : vector<1x48x256xf32> to vector<48x256xf32>
    %108 = arith.mulf %105, %107 : vector<48x256xf32>
    %109 = arith.addf %104, %108 : vector<48x256xf32>
    %c16_i32_61 = arith.constant 16 : i32
    %110 = tpu.dynamic_rotate %101 by %c16_i32_61 dim 1 : vector<48x256xf32>, i32 -> vector<48x256xf32>
    %c1_62 = arith.constant 1 : index
    %c0_63 = arith.constant 0 : index
    %c0_64 = arith.constant 0 : index
    %111 = vector.load %arg11[%c1_62, %c0_63, %c0_64] : memref<9x48x256xf32, #tpu.memory_space<vmem>>, vector<1x48x256xf32>
    %112 = vector.shape_cast %111 : vector<1x48x256xf32> to vector<48x256xf32>
    %113 = arith.mulf %110, %112 : vector<48x256xf32>
    %114 = arith.addf %109, %113 : vector<48x256xf32>
    %c15_i32_65 = arith.constant 15 : i32
    %115 = tpu.dynamic_rotate %101 by %c15_i32_65 dim 1 : vector<48x256xf32>, i32 -> vector<48x256xf32>
    %c2_66 = arith.constant 2 : index
    %c0_67 = arith.constant 0 : index
    %c0_68 = arith.constant 0 : index
    %116 = vector.load %arg11[%c2_66, %c0_67, %c0_68] : memref<9x48x256xf32, #tpu.memory_space<vmem>>, vector<1x48x256xf32>
    %117 = vector.shape_cast %116 : vector<1x48x256xf32> to vector<48x256xf32>
    %118 = arith.mulf %115, %117 : vector<48x256xf32>
    %119 = arith.addf %114, %118 : vector<48x256xf32>
    %c1_i32_69 = arith.constant 1 : i32
    %120 = tpu.dynamic_rotate %101 by %c1_i32_69 dim 1 : vector<48x256xf32>, i32 -> vector<48x256xf32>
    %c3_70 = arith.constant 3 : index
    %c0_71 = arith.constant 0 : index
    %c0_72 = arith.constant 0 : index
    %121 = vector.load %arg11[%c3_70, %c0_71, %c0_72] : memref<9x48x256xf32, #tpu.memory_space<vmem>>, vector<1x48x256xf32>
    %122 = vector.shape_cast %121 : vector<1x48x256xf32> to vector<48x256xf32>
    %123 = arith.mulf %120, %122 : vector<48x256xf32>
    %124 = arith.addf %119, %123 : vector<48x256xf32>
    %c255_i32_73 = arith.constant 255 : i32
    %125 = tpu.dynamic_rotate %101 by %c255_i32_73 dim 1 : vector<48x256xf32>, i32 -> vector<48x256xf32>
    %c5_74 = arith.constant 5 : index
    %c0_75 = arith.constant 0 : index
    %c0_76 = arith.constant 0 : index
    %126 = vector.load %arg11[%c5_74, %c0_75, %c0_76] : memref<9x48x256xf32, #tpu.memory_space<vmem>>, vector<1x48x256xf32>
    %127 = vector.shape_cast %126 : vector<1x48x256xf32> to vector<48x256xf32>
    %128 = arith.mulf %125, %127 : vector<48x256xf32>
    %129 = arith.addf %124, %128 : vector<48x256xf32>
    %c241_i32_77 = arith.constant 241 : i32
    %130 = tpu.dynamic_rotate %101 by %c241_i32_77 dim 1 : vector<48x256xf32>, i32 -> vector<48x256xf32>
    %c6_78 = arith.constant 6 : index
    %c0_79 = arith.constant 0 : index
    %c0_80 = arith.constant 0 : index
    %131 = vector.load %arg11[%c6_78, %c0_79, %c0_80] : memref<9x48x256xf32, #tpu.memory_space<vmem>>, vector<1x48x256xf32>
    %132 = vector.shape_cast %131 : vector<1x48x256xf32> to vector<48x256xf32>
    %133 = arith.mulf %130, %132 : vector<48x256xf32>
    %134 = arith.addf %129, %133 : vector<48x256xf32>
    %c240_i32_81 = arith.constant 240 : i32
    %135 = tpu.dynamic_rotate %101 by %c240_i32_81 dim 1 : vector<48x256xf32>, i32 -> vector<48x256xf32>
    %c7_82 = arith.constant 7 : index
    %c0_83 = arith.constant 0 : index
    %c0_84 = arith.constant 0 : index
    %136 = vector.load %arg11[%c7_82, %c0_83, %c0_84] : memref<9x48x256xf32, #tpu.memory_space<vmem>>, vector<1x48x256xf32>
    %137 = vector.shape_cast %136 : vector<1x48x256xf32> to vector<48x256xf32>
    %138 = arith.mulf %135, %137 : vector<48x256xf32>
    %139 = arith.addf %134, %138 : vector<48x256xf32>
    %c239_i32_85 = arith.constant 239 : i32
    %140 = tpu.dynamic_rotate %101 by %c239_i32_85 dim 1 : vector<48x256xf32>, i32 -> vector<48x256xf32>
    %c8_86 = arith.constant 8 : index
    %c0_87 = arith.constant 0 : index
    %c0_88 = arith.constant 0 : index
    %141 = vector.load %arg11[%c8_86, %c0_87, %c0_88] : memref<9x48x256xf32, #tpu.memory_space<vmem>>, vector<1x48x256xf32>
    %142 = vector.shape_cast %141 : vector<1x48x256xf32> to vector<48x256xf32>
    %143 = arith.mulf %140, %142 : vector<48x256xf32>
    %144 = arith.addf %139, %143 : vector<48x256xf32>
    %c48_89 = arith.constant 48 : index
    %c0_90 = arith.constant 0 : index
    %145 = vector.load %arg10[%c48_89, %c0_90] : memref<152x1xf32, #tpu.memory_space<vmem>>, vector<48x1xf32>
    %146 = vector.broadcast %145 : vector<48x1xf32> to vector<48x256xf32>
    %147 = arith.addf %144, %146 : vector<48x256xf32>
    %cst_91 = arith.constant 0.000000e+00 : f32
    %148 = vector.broadcast %cst_91 : f32 to vector<48x256xf32>
    %149 = arith.maximumf %147, %148 : vector<48x256xf32>
    %cst_92 = arith.constant dense<0.000000e+00> : vector<48xf32>
    %150 = vector.multi_reduction <add>, %149, %cst_92 [1] : vector<48x256xf32> to vector<48xf32>
    %151 = vector.shape_cast %150 : vector<48xf32> to vector<48x1xf32>
    %cst_93 = arith.constant 2.560000e+02 : f32
    %152 = vector.broadcast %cst_93 : f32 to vector<48x1xf32>
    %153 = arith.divf %151, %152 : vector<48x1xf32>
    %c0_94 = arith.constant 0 : index
    %c0_95 = arith.constant 0 : index
    %154 = vector.load %arg12[%c0_94, %c0_95] : memref<48x3xf32, #tpu.memory_space<vmem>>, vector<48x3xf32>
    %155 = vector.broadcast %153 : vector<48x1xf32> to vector<48x3xf32>
    %156 = arith.mulf %154, %155 : vector<48x3xf32>
    %cst_96 = arith.constant dense<0.000000e+00> : vector<3xf32>
    %157 = vector.multi_reduction <add>, %156, %cst_96 [0] : vector<48x3xf32> to vector<3xf32>
    %158 = vector.shape_cast %157 : vector<3xf32> to vector<1x3xf32>
    %c0_97 = arith.constant 0 : index
    %c0_98 = arith.constant 0 : index
    %159 = vector.load %arg13[%c0_97, %c0_98] : memref<1x3xf32, #tpu.memory_space<vmem>>, vector<1x3xf32>
    %160 = arith.addf %158, %159 : vector<1x3xf32>
    %cst_99 = arith.constant 0.000000e+00 : f32
    %161 = vector.broadcast %cst_99 : f32 to vector<1x3xf32>
    %162 = arith.maximumf %160, %161 : vector<1x3xf32>
    %c0_100 = arith.constant 0 : index
    %c0_101 = arith.constant 0 : index
    %163 = vector.load %arg14[%c0_100, %c0_101] : memref<48x3xf32, #tpu.memory_space<vmem>>, vector<48x3xf32>
    %164 = vector.broadcast %162 : vector<1x3xf32> to vector<48x3xf32>
    %165 = arith.mulf %163, %164 : vector<48x3xf32>
    %cst_102 = arith.constant dense<0.000000e+00> : vector<48xf32>
    %166 = vector.multi_reduction <add>, %165, %cst_102 [1] : vector<48x3xf32> to vector<48xf32>
    %167 = vector.shape_cast %166 : vector<48xf32> to vector<48x1xf32>
    %c96 = arith.constant 96 : index
    %c0_103 = arith.constant 0 : index
    %168 = vector.load %arg10[%c96, %c0_103] : memref<152x1xf32, #tpu.memory_space<vmem>>, vector<48x1xf32>
    %169 = arith.addf %167, %168 : vector<48x1xf32>
    %cst_104 = arith.constant 0.000000e+00 : f32
    %170 = vector.broadcast %cst_104 : f32 to vector<48x1xf32>
    %171 = arith.subf %170, %169 : vector<48x1xf32>
    %172 = math.exp %171 : vector<48x1xf32>
    %cst_105 = arith.constant 1.000000e+00 : f32
    %173 = vector.broadcast %cst_105 : f32 to vector<48x1xf32>
    %174 = arith.addf %173, %172 : vector<48x1xf32>
    %cst_106 = arith.constant 1.000000e+00 : f32
    %175 = vector.broadcast %cst_106 : f32 to vector<48x1xf32>
    %176 = arith.divf %175, %174 : vector<48x1xf32>
    %177 = vector.broadcast %176 : vector<48x1xf32> to vector<48x256xf32>
    %178 = arith.mulf %149, %177 : vector<48x256xf32>
    %c0_107 = arith.constant 0 : index
    %c0_108 = arith.constant 0 : index
    %179 = vector.load %arg15[%c0_107, %c0_108] : memref<8x48xf32, #tpu.memory_space<vmem>>, vector<8x48xf32>
    %cst_109 = arith.constant dense<0.000000e+00> : vector<8x256xf32>
    %180 = tpu.matmul %179, %178, %cst_109 {dimension_numbers = #tpu.dot_dimension_numbers<[1], [0], [0], [1], [0, 0, 1, 1], [], []>} : vector<8x48xf32>, vector<48x256xf32>, vector<8x256xf32> -> vector<8x256xf32>
    %181 = arith.addf %180, %94 : vector<8x256xf32>
    %c144 = arith.constant 144 : index
    %c0_110 = arith.constant 0 : index
    %182 = vector.load %arg10[%c144, %c0_110] : memref<152x1xf32, #tpu.memory_space<vmem>>, vector<8x1xf32>
    %183 = vector.broadcast %182 : vector<8x1xf32> to vector<8x256xf32>
    %184 = arith.addf %181, %183 : vector<8x256xf32>
    %cst_111 = arith.constant 0.000000e+00 : f32
    %185 = vector.broadcast %cst_111 : f32 to vector<8x256xf32>
    %186 = arith.maximumf %184, %185 : vector<8x256xf32>
    %c0_112 = arith.constant 0 : index
    %c0_113 = arith.constant 0 : index
    %c0_114 = arith.constant 0 : index
    %187 = vector.load %arg16[%c0_112, %c0_113, %c0_114] : memref<1x8x256xf32, #tpu.memory_space<vmem>>, vector<1x8x256xf32>
    %188 = vector.shape_cast %187 : vector<1x8x256xf32> to vector<8x256xf32>
    %189 = vector.shape_cast %186 : vector<8x256xf32> to vector<1x8x256xf32>
    tpu.vector_store %arg16[%c0_112, %c0_113, %c0_114], %189 {strides = array<i32>} : memref<1x8x256xf32, #tpu.memory_space<vmem>>, vector<1x8x256xf32>,
    return
  }
  func.func @transform_0(%arg0: i32) -> (i32, i32, i32) {
    %c0_i32 = arith.constant 0 : i32
    %c0_i32_0 = arith.constant 0 : i32
    %c0_i32_1 = arith.constant 0 : i32
    return %arg0, %c0_i32, %c0_i32_0 : i32, i32, i32
  }
  func.func @transform_1(%arg0: i32) -> (i32, i32) {
    %c0_i32 = arith.constant 0 : i32
    %c0_i32_0 = arith.constant 0 : i32
    %c0_i32_1 = arith.constant 0 : i32
    return %c0_i32, %c0_i32_0 : i32, i32
  }
  func.func @transform_2(%arg0: i32) -> (i32, i32) {
    %c0_i32 = arith.constant 0 : i32
    %c0_i32_0 = arith.constant 0 : i32
    %c0_i32_1 = arith.constant 0 : i32
    return %c0_i32, %c0_i32_0 : i32, i32
  }
  func.func @transform_3(%arg0: i32) -> (i32, i32, i32) {
    %c0_i32 = arith.constant 0 : i32
    %c0_i32_0 = arith.constant 0 : i32
    %c0_i32_1 = arith.constant 0 : i32
    %c0_i32_2 = arith.constant 0 : i32
    return %c0_i32, %c0_i32_0, %c0_i32_1 : i32, i32, i32
  }
  func.func @transform_4(%arg0: i32) -> (i32, i32) {
    %c0_i32 = arith.constant 0 : i32
    %c0_i32_0 = arith.constant 0 : i32
    %c0_i32_1 = arith.constant 0 : i32
    return %c0_i32, %c0_i32_0 : i32, i32
  }
  func.func @transform_5(%arg0: i32) -> (i32, i32) {
    %c0_i32 = arith.constant 0 : i32
    %c0_i32_0 = arith.constant 0 : i32
    %c0_i32_1 = arith.constant 0 : i32
    return %c0_i32, %c0_i32_0 : i32, i32
  }
  func.func @transform_6(%arg0: i32) -> (i32, i32) {
    %c0_i32 = arith.constant 0 : i32
    %c0_i32_0 = arith.constant 0 : i32
    %c0_i32_1 = arith.constant 0 : i32
    return %c0_i32, %c0_i32_0 : i32, i32
  }
  func.func @transform_7(%arg0: i32) -> (i32, i32) {
    %c0_i32 = arith.constant 0 : i32
    %c0_i32_0 = arith.constant 0 : i32
    %c0_i32_1 = arith.constant 0 : i32
    return %c0_i32, %c0_i32_0 : i32, i32
  }
  func.func @transform_8(%arg0: i32) -> (i32, i32) {
    %c0_i32 = arith.constant 0 : i32
    %c0_i32_0 = arith.constant 0 : i32
    %c0_i32_1 = arith.constant 0 : i32
    return %c0_i32, %c0_i32_0 : i32, i32
  }
  func.func @transform_9(%arg0: i32) -> (i32, i32) {
    %c0_i32 = arith.constant 0 : i32
    %c0_i32_0 = arith.constant 0 : i32
    %c0_i32_1 = arith.constant 0 : i32
    return %c0_i32, %c0_i32_0 : i32, i32
  }
  func.func @transform_10(%arg0: i32) -> (i32, i32, i32) {
    %c0_i32 = arith.constant 0 : i32
    %c0_i32_0 = arith.constant 0 : i32
    %c0_i32_1 = arith.constant 0 : i32
    %c0_i32_2 = arith.constant 0 : i32
    return %c0_i32, %c0_i32_0, %c0_i32_1 : i32, i32, i32
  }
  func.func @transform_11(%arg0: i32) -> (i32, i32) {
    %c0_i32 = arith.constant 0 : i32
    %c0_i32_0 = arith.constant 0 : i32
    %c0_i32_1 = arith.constant 0 : i32
    return %c0_i32, %c0_i32_0 : i32, i32
  }
  func.func @transform_12(%arg0: i32) -> (i32, i32) {
    %c0_i32 = arith.constant 0 : i32
    %c0_i32_0 = arith.constant 0 : i32
    %c0_i32_1 = arith.constant 0 : i32
    return %c0_i32, %c0_i32_0 : i32, i32
  }
  func.func @transform_13(%arg0: i32) -> (i32, i32) {
    %c0_i32 = arith.constant 0 : i32
    %c0_i32_0 = arith.constant 0 : i32
    %c0_i32_1 = arith.constant 0 : i32
    return %c0_i32, %c0_i32_0 : i32, i32
  }
  func.func @transform_14(%arg0: i32) -> (i32, i32) {
    %c0_i32 = arith.constant 0 : i32
    %c0_i32_0 = arith.constant 0 : i32
    %c0_i32_1 = arith.constant 0 : i32
    return %c0_i32, %c0_i32_0 : i32, i32
  }
  func.func @transform_15(%arg0: i32) -> (i32, i32, i32) {
    %c0_i32 = arith.constant 0 : i32
    %c0_i32_0 = arith.constant 0 : i32
    %c0_i32_1 = arith.constant 0 : i32
    return %arg0, %c0_i32, %c0_i32_0 : i32, i32, i32
  }
}

</mosaic_0001>

<bundles_post_ra>
// kernel: tpu_custom_call.1
= control target key start
LH: loop header
LB: loop body
LE: loop exit
PB: predicated region body
PF: predicated region fallthrough
CT: control target
= control target key end

     0   :  { %s4306_s0 = inlined_call_operand.vmem [shape: f32[2,4,256], index: 0, kind: input, shape index: {}]   ;;  %s4307_s1 = inlined_call_operand.vmem [shape: f32[32,4], index: 1, kind: input, shape index: {}]   ;;  %s4308_s2 = inlined_call_operand.vmem [shape: f32[80,1], index: 2, kind: input, shape index: {}]   ;;  %s4309_s3 = inlined_call_operand.vmem [shape: f32[9,24,256], index: 3, kind: input, shape index: {}]   ;;  %s4310_s4 = inlined_call_operand.vmem [shape: f32[24,1], index: 4, kind: input, shape index: {}]   ;;  %s4311_s5 = inlined_call_operand.<no memory space> [shape: f32[1,1], index: 5, kind: input, shape index: {}]   ;;  %s4312_s6 = inlined_call_operand.vmem [shape: f32[24,1], index: 6, kind: input, shape index: {}]   ;;  %s4313_s7 = inlined_call_operand.vmem [shape: f32[8,24], index: 7, kind: input, shape index: {}]   ;;  %s4314_s8 = inlined_call_operand.vmem [shape: f32[48,8], index: 8, kind: input, shape index: {}]   ;;  %s4315_s9 = inlined_call_operand.vmem [shape: f32[152,1], index: 9, kind: input, shape index: {}]   ;;  %s4316_s10 = inlined_call_operand.hbm [shape: f32[9,48,256], index: 10, kind: input, shape index: {}]   ;;  %s4317_s11 = inlined_call_operand.vmem [shape: f32[48,3], index: 11, kind: input, shape index: {}]   ;;  %s4318_s12 = inlined_call_operand.vmem [shape: f32[1,3], index: 12, kind: input, shape index: {}]   ;;  %s4319_s13 = inlined_call_operand.vmem [shape: f32[48,3], index: 13, kind: input, shape index: {}]   ;;  %s4320_s14 = inlined_call_operand.vmem [shape: f32[8,48], index: 14, kind: input, shape index: {}]   ;;  %s4321_s15 = inlined_call_operand.hbm [shape: f32[2,8,256], index: 15, kind: output, shape index: {}]  }
   0x1   :  { %v20_v0 = vstv %s4311_s5 }
   0x2   :  { %21 = vst [vmem:[#allocation2] sm:$0x1] %v20_v0 }
   0x3   :  { %22 = vsyncpa [#allocation4], 0 }
   0x4   :  { %23 = vsyncpa [#allocation5], 0 }
   0x5   :  { %25 = vsyncpa [#allocation5 + $0x1], 0  ;;  %s2769_s20 = smov 0   ;;  %s2771_s21 = smov 0  }
   0x6   :  { %s2773_s22 = smov 0   ;;  %s2775_s23 = smov 0  }
   0x7 LB: > { %4352 = sst [smem:[#allocation9_spill]] %s2666_s22  ;;  %s2790_s5 = sadd.s32 4294967295, %s2670_s23   ;;  %s2670_s23 = sphi %s2775_s23, %s4390_s23   ;;  %s2666_s22 = sphi %s2773_s22, %s4392_s22   ;;  %s2662_s21 = sphi %s2771_s21, %s4394_s21   ;;  %s2658_s20 = sphi %s2769_s20, %s4393_s20  }
   0x8   : > { %s2377_s24 = sadd.s32 4294967294, %s2670_s23   ;;  %s2794_s25 = sadd.s32 1, %s2670_s23  }
   0x9   : > { %4353 = sst [smem:[#allocation10_spill]] %s2794_s25  ;;  %s358_s26 = sadd.s32 1, %s2666_s22 }
   0xa   : > { %s355_s27 = ssub.s32 %s2670_s23, %s2794_s25  ;;  %p368_p0 = scmp.ne.s32.totalorder %s2666_s22, %s2662_s21 }
   0xb   : > { %p356_p1 = scmp.eq.s32.totalorder %s355_s27, 0  ;;  %p369_p2 = scmp.eq.s32.totalorder %s2790_s5, 1 }
   0xc   : > { %p374_p3 = scmp.ne.s32.totalorder %s2662_s21, %s2658_s20  ;;  %p375_p4 = scmp.eq.s32.totalorder %s2377_s24, 1 }
   0xd   : > { %s2805_s28 = scalar_select %p356_p1, %s2666_s22, %s358_s26  }
   0xe   : > { %p2807_p5 = por %p369_p2, %p368_p0  ;;  %p2811_p6 = por %p375_p4, %p374_p3 }
   0xf   : > { %4354 = sst [smem:[#allocation11_spill]] %s2805_s28  ;;  %p2378_p7 = scmp.ge.s32.totalorder %s2670_s23, 1 }
  0x10   : > { %s4355_s29 = scalar_select %p2807_p5, 1, 0 }
  0x11   : > { %s4356_s30 = scalar_select %p2811_p6, 1, 0 }
  0x12   : > { %p382_p8 = scmp.lt.s32.totalorder %s2670_s23, 3  ;;  %p4326_p9 = scmp.eq.s32.totalorder %s2790_s5, 0 }
  0x13   : > { %4357 = sst [smem:[#allocation12_spill]] %s4356_s30  ;;  %s2672_s17 = smov [#allocation3]  }
  0x14   : > { %p2818_p10 = pnand %p2378_p7, %p382_p8  ;;  %s421_s18 = sshll.u32 %s2672_s17, 4  ;;  %s422_s18 = int_to_ptr.vmem [resolvable:$true] %s421_s18 }
  0x15   : > { %s2576_s27 = scalar_lea.hbm %s4316_s10, 13824 }
  0x16   : > { %s4358_s16 = scalar_select %p2818_p10, 1, 0 }
  0x17   : > { %p2481_p11 = pneg %p2818_p10  ;;  %p2577_p13 = scmp.ne.s32.totalorder %s4316_s10, %s2576_s27 }
  0x18   : > { %p2583_p3 = scmp.lt.u32.totalorder %s2576_s27, %s4316_s10 }
  0x19   : > { %p2826_p12 = pnand %p4326_p9, %p2481_p11 }
  0x1b   : > { %p2578_p0 = pneg %p2826_p12 }
  0x1d   : > { %p2579_p1 = pnand %p2578_p0, %p2577_p13 }
  0x1f   : > { %p2580_p2 = pneg %p2579_p1 }
  0x21   : > { %p2585_p4 = pnand %p2583_p3, %p2580_p2 }
  0x23   : > { %2588 = shalt.err (!%p2585_p4)
}
  0x24   : > { %s2589_s30 = scalar_lea.vmem %s422_s18, 13824  ;;  %p2597_p9 = scmp.lt.s32.totalorder %s422_s18, %s422_s18 }
  0x25   : > { %p2590_p7 = scmp.ne.s32.totalorder %s422_s18, %s2589_s30  ;;  %p2598_p6 = scmp.lt.s32.totalorder %s2589_s30, %s2589_s30 }
  0x27   : > { %p2592_p8 = pnand %p2590_p7, %p2578_p0  ;;  %p2599_p5 = por %p2598_p6, %p2597_p9 }
  0x29   : > { %p2593_p11 = pneg %p2592_p8 }
  0x2b   : > { %p2600_p10 = pnand %p2599_p5, %p2593_p11 }
  0x2d   : > { %2603 = shalt.err (!%p2600_p10)
}
  0x2e   : > { %s2673_s22 = smov 256   ;;  %s2674_s28 = smov 16  }
  0x2f   : > { %2484 = dma.hbm_to_vmem [thread:$0]  (!%p2826_p12), %s4316_s10, 13824, %s422_s18, [#allocation4], %s2673_s22, %s2673_s22, %s2674_s28  }
  0x30   : > { %p4360_p13 = scmp.ne.s32.totalorder %s4358_s16, 0 }
  0x32   : > { %457 = sbr.rel (%p4360_p13) target bundleno = 2316 (0x90c), region = 80 }
  0x39   : > { %p4361_p1 = scmp.eq.s32.totalorder %s2790_s5, 0 }
  0x3b   : > { %2649 = dma.done.wait (%p4361_p1), [#allocation4], 13824   ;;  %p4362_p0 = pmov %p4361_p1 }
  0x3c   : > { %p505_p5 = scmp.lt.s32.totalorder %s2790_s5, 1  ;;  %v2675_v1 = vmov 0.0   ;;  %v2676_v2 = vmov 0   ;;  %vm530_vm0 = vcmask 1043456   ;;  %v624_v5 = vld [vmem:[%s4308_s2] sm:$0xff]  ;;  %vm517_vm1 = vcmask 31744  }
  0x3d   : > { %2651 = vsyncadd (%p4362_p0), [#allocation4], 4294953472  ;;  %599 = vmatprep.mubr.f32.mxu0 %v2675_v1  ;;  %1311 = vmatprep.mubr.f32.mxu1 %v2675_v1  ;;  %v511_v6 = vld [vmem:[%s4307_s1] sm:$0xff]  ;;  %v626_v7 = vld [vmem:[%s4308_s2 + $0x10] sm:$0xff]  ;;  %s4341_s16 = smov 16   ;;  %s4339_s18 = smov 15   ;;  %v679_v51 = vlaneseq }
  0x3e   : > { %s506_s25 = scalar_select %p505_p5, %s2790_s5, 1  ;;  %2537 = vset.pattern.permute.xlu0 %v2676_v2  ;;  %2538 = vset.pattern.permute.xlu1 %v2676_v2  ;;  %v625_v8 = vld [vmem:[%s4308_s2 + $0x8] sm:$0xff]  ;;  %v972_v9 = vld [vmem:[%s4308_s2 + $0x18] sm:$0xff]  ;;  %v973_v11 = vld [vmem:[%s4308_s2 + $0x20] sm:$0xff]  ;;  %vm1021_vm10 = vcmask 7168   ;;  %vm1095_vm11 = vcmask 195584  }
  0x3f   : > { %629 = vperm.xlu0 %2537, %v624_v5   ;;  %639 = vperm.xlu1 %2538, %v626_v7   ;;  %v512_v10 = vld [vmem:[%s4307_s1 + $0x8] sm:$0xff]  ;;  %v513_v13 = vld [vmem:[%s4307_s1 + $0x10] sm:$0xff]  ;;  %s4335_s27 = smov 127   ;;  %s4333_s17 = smov 113   ;;  %v3027_v54 = vand.u32 127, %v679_v51  ;;  %v688_v57 = vld [vmem:[%s4309_s3] sm:$0xff] }
  0x40   : > { %s2453_s30 = sshll.u32 %s506_s25, 3  ;;  %v974_v12 = vld [vmem:[%s4308_s2 + $0x28] sm:$0xff]  ;;  %s4331_s22 = smov 112   ;;  %v2392_v63 = vld [vmem:[%s4309_s3 + $0xc0] sm:$0xff]  ;;  %v2394_v2 = vld [vmem:[%s4309_s3 + $0xd0] sm:$0xff]  ;;  %vm1222_vm12 = vcmask 64512  }
  0x41   : > { %s509_s19 = scalar_lea.vmem %s4306_s0, %s2453_s30  ;;  %s2677_s30 = smov 17   ;;  %vm681_vm2 = vcmp.lt.s32.totalorder %v3027_v54, 17  ;;  %v689_v58 = vld [vmem:[%s4309_s3 + $0x8] sm:$0xff]  ;;  %vm718_vm3 = vcmp.lt.s32.totalorder %v3027_v54, 16  ;;  %v2398_v5 = vld [vmem:[%s4309_s3 + $0x30] sm:$0xff]  ;;  %vm756_vm4 = vcmp.lt.s32.totalorder %v3027_v54, 15 }
  0x42   : > { %v510_v3 = vld [vmem:[%s509_s19] sm:$0xff]  ;;  %s4337_s19 = smov 1   ;;  %s4329_s28 = smov 111   ;;  %v2393_v0 = vld [vmem:[%s4309_s3 + $0xc8] sm:$0xff]  ;;  %vm794_vm5 = vcmp.lt.s32.totalorder %v3027_v54, 1  ;;  %vm832_vm6 = vcmp.lt.s32.totalorder %v3027_v54, 127 }
  0x43   : > { %v516_v4 = vcombine.high %v510_v3, %v510_v3  ;;  %634 = vperm.xlu0 %2537, %v625_v8   ;;  %977 = vperm.xlu1 %2538, %v972_v9   ;;  %v2395_v9 = vld [vmem:[%s4309_s3 + $0xd8] sm:$0xff]  ;;  %vm870_vm7 = vcmp.lt.s32.totalorder %v3027_v54, 113  ;;  %vm908_vm8 = vcmp.lt.s32.totalorder %v3027_v54, 112  ;;  %vm946_vm9 = vcmp.lt.s32.totalorder %v3027_v54, 111  ;;  %s4368_s24 = smov 1   ;;  %s4369_s26 = smov 127  }
  0x44   : > { %s4371_s25 = smov 112   ;;  %vm2058_vm13 = vcmask 23552   ;;  %vm2204_vm14 = vcmask 392192   ;;  %p4387_p9 = scmp.ne.s32.totalorder %s4355_s29, 0 }
  0x45   : > { %2386 = vmatprep.subr.msk.mxu0 %vm530_vm0, %v516_v4 }
  0x46   : > { %2387 = vmatpush1.msk.msra.mxu0 %vm530_vm0, %v510_v3 }
  0x47   : > { %2388 = vmatmul.mubr.msk.f32.vlgmr.msra.gmra.mrb[0].mxu0 %vm517_vm1, %v511_v6  ;;  %982 = vperm.xlu0 %2537, %v973_v11   ;;  %v2399_v6 = vld [vmem:[%s4309_s3 + $0x38] sm:$0xff] }
  0x48   : > { %605 = vmatprep.mubr.f32.mxu0 %v2675_v1  ;;  %987 = vperm.xlu1 %2538, %v974_v12  }
  0x4b   : > { %2389 = vmatmul.mubr.msk.f32.gmra.mrb[2].mxu0 %vm517_vm1, %v512_v10 }
  0x4c   : > { %611 = vmatprep.mubr.f32.mxu0 %v2675_v1 }
  0x4f   : > { %2390 = vmatmul.mubr.msk.f32.gmra.mrb[4].mxu0 %vm517_vm1, %v513_v13 }
  0x50   : > { %617 = vmatprep.mubr.f32.mxu0 %v2675_v1 }
  0xbe   : > { %v630_v14 = vpop.permute.xlu0 %629  ;;  %v640_v30 = vpop.permute.xlu1 %639 }
  0xc2   : > { %v635_v19 = vpop.permute.xlu0 %634  ;;  %v3000_v35 = vpop.permute.xlu1 %977 }
  0xc6   : > { %v3004_v37 = vpop.permute.xlu0 %982 }
  0xc7   : > { %v3002_v36 = vpop.permute.xlu1 %987 }
 0x11a   : > { %v601_v15 = vpop.f32.mrb[0].mxu0 }
 0x11b   : > { %v642_v16 = vadd.f32 %v630_v14, %v601_v15  ;;  %v603_v17 = vpop.f32.mrb[1].mxu0  ;;  %v690_v15 = vld [vmem:[%s4309_s3 + $0x10] sm:$0xff] }
 0x11c   : > { %v643_v26 = vadd.f32 %v630_v14, %v603_v17 }
 0x11d   : > { %v2892_v18 = vmax.f32 %v642_v16, 0.0  ;;  %v691_v16 = vld [vmem:[%s4309_s3 + $0x18] sm:$0xff] }
 0x11e   : > { %v607_v20 = vpop.f32.mrb[2].mxu0  ;;  %v2926_v27 = vmax.f32 %v643_v26, 0.0 }
 0x11f   : > { %v644_v21 = vadd.f32 %v635_v19, %v607_v20  ;;  %667 = vrot.lane.b32.xlu1 %v2892_v18, %s2677_s30  ;;  %v609_v22 = vpop.f32.mrb[3].mxu0  ;;  %v661_v10 = vmul.f32 %v2392_v63, %v2892_v18 }
 0x120   : > { %v645_v28 = vadd.f32 %v635_v19, %v609_v22  ;;  %v662_v13 = vmul.f32 %v2393_v0, %v2926_v27  ;;  %v2406_v0 = vld [vmem:[%s4309_s3 + $0x70] sm:$0xff] }
 0x121   : > { %v2896_v23 = vmax.f32 %v644_v21, 0.0 }
 0x122   : > { %v613_v24 = vpop.f32.mrb[4].mxu0  ;;  %v2932_v29 = vmax.f32 %v645_v28, 0.0 }
 0x123   : > { %706 = vrot.lane.b32.xlu1 %v2892_v18, %s4341_s16  ;;  %669 = vrot.lane.b32.xlu0 %v2896_v23, %s2677_s30  ;;  %v615_v25 = vpop.f32.mrb[5].mxu0  ;;  %v646_v31 = vadd.f32 %v640_v30, %v613_v24  ;;  %v663_v14 = vmul.f32 %v2394_v2, %v2896_v23  ;;  %v2404_v24 = vld [vmem:[%s4309_s3 + $0x60] sm:$0xff] }
 0x124   : > { %v647_v33 = vadd.f32 %v640_v30, %v615_v25  ;;  %v664_v21 = vmul.f32 %v2395_v9, %v2932_v29  ;;  %v2405_v25 = vld [vmem:[%s4309_s3 + $0x68] sm:$0xff]  ;;  %v2400_v30 = vld [vmem:[%s4309_s3 + $0x40] sm:$0xff]  ;;  %v2417_v9 = vld [vmem:[%s4309_s3 + $0xf8] sm:$0xff] }
 0x125   : > { %v2958_v32 = vmax.f32 %v646_v31, 0.0  ;;  %v2401_v31 = vld [vmem:[%s4309_s3 + $0x48] sm:$0xff] }
 0x126   : > { %v2964_v34 = vmax.f32 %v647_v33, 0.0 }
 0x127   : > { %744 = vrot.lane.b32.xlu1 %v2892_v18, %s4339_s18  ;;  %708 = vrot.lane.b32.xlu0 %v2896_v23, %s4341_s16 }
 0x12b   : > { %782 = vrot.lane.b32.xlu1 %v2892_v18, %s4337_s19  ;;  %746 = vrot.lane.b32.xlu0 %v2896_v23, %s4339_s18 }
 0x12f   : > { %820 = vrot.lane.b32.xlu1 %v2892_v18, %s4335_s27  ;;  %784 = vrot.lane.b32.xlu0 %v2896_v23, %s4337_s19 }
 0x133   : > { %858 = vrot.lane.b32.xlu1 %v2892_v18, %s4333_s17  ;;  %822 = vrot.lane.b32.xlu0 %v2896_v23, %s4335_s27 }
 0x137   : > { %896 = vrot.lane.b32.xlu1 %v2892_v18, %s4331_s22  ;;  %860 = vrot.lane.b32.xlu0 %v2896_v23, %s4333_s17 }
 0x13b   : > { %934 = vrot.lane.b32.xlu1 %v2892_v18, %s4329_s28  ;;  %898 = vrot.lane.b32.xlu0 %v2896_v23, %s4331_s22 }
 0x13f   : > { %673 = vrot.lane.b32.xlu1 %v2926_v27, %s2677_s30  ;;  %936 = vrot.lane.b32.xlu0 %v2896_v23, %s4329_s28 }
 0x143   : > { %712 = vrot.lane.b32.xlu1 %v2926_v27, %s4341_s16  ;;  %675 = vrot.lane.b32.xlu0 %v2932_v29, %s2677_s30 }
 0x147   : > { %750 = vrot.lane.b32.xlu1 %v2926_v27, %s4339_s18  ;;  %714 = vrot.lane.b32.xlu0 %v2932_v29, %s4341_s16 }
 0x14b   : > { %788 = vrot.lane.b32.xlu1 %v2926_v27, %s4337_s19  ;;  %752 = vrot.lane.b32.xlu0 %v2932_v29, %s4339_s18 }
 0x14f   : > { %826 = vrot.lane.b32.xlu1 %v2926_v27, %s4335_s27  ;;  %790 = vrot.lane.b32.xlu0 %v2932_v29, %s4337_s19 }
 0x153   : > { %864 = vrot.lane.b32.xlu1 %v2926_v27, %s4333_s17  ;;  %828 = vrot.lane.b32.xlu0 %v2932_v29, %s4335_s27 }
 0x157   : > { %902 = vrot.lane.b32.xlu1 %v2926_v27, %s4331_s22  ;;  %866 = vrot.lane.b32.xlu0 %v2932_v29, %s4333_s17 }
 0x15b   : > { %940 = vrot.lane.b32.xlu1 %v2926_v27, %s4329_s28  ;;  %904 = vrot.lane.b32.xlu0 %v2932_v29, %s4331_s22 }
 0x15f   : > { %942 = vrot.lane.b32.xlu0 %v2932_v29, %s4329_s28  ;;  %671 = vrot.lane.b32.xlu1 %v2958_v32, %s2677_s30 }
 0x163   : > { %710 = vrot.lane.b32.xlu1 %v2958_v32, %s4341_s16  ;;  %677 = vrot.lane.b32.xlu0 %v2964_v34, %s2677_s30 }
 0x167   : > { %748 = vrot.lane.b32.xlu1 %v2958_v32, %s4339_s18  ;;  %716 = vrot.lane.b32.xlu0 %v2964_v34, %s4341_s16 }
 0x16b   : > { %786 = vrot.lane.b32.xlu1 %v2958_v32, %s4337_s19  ;;  %754 = vrot.lane.b32.xlu0 %v2964_v34, %s4339_s18 }
 0x16f   : > { %824 = vrot.lane.b32.xlu1 %v2958_v32, %s4335_s27  ;;  %792 = vrot.lane.b32.xlu0 %v2964_v34, %s4337_s19  ;;  %s4366_s19 = smov 16  }
 0x173   : > { %862 = vrot.lane.b32.xlu1 %v2958_v32, %s4333_s17  ;;  %830 = vrot.lane.b32.xlu0 %v2964_v34, %s4335_s27  ;;  %s4367_s27 = smov 15  }
 0x177   : > { %900 = vrot.lane.b32.xlu1 %v2958_v32, %s4331_s22  ;;  %868 = vrot.lane.b32.xlu0 %v2964_v34, %s4333_s17  ;;  %s4372_s17 = smov 111  }
 0x17b   : > { %944 = vrot.lane.b32.xlu1 %v2964_v34, %s4329_s28  ;;  %906 = vrot.lane.b32.xlu0 %v2964_v34, %s4331_s22 }
 0x17f   : > { %938 = vrot.lane.b32.xlu0 %v2958_v32, %s4329_s28  ;;  %s4370_s28 = smov 113  }
 0x191   : > { %v668_v38 = vpop.permute.xlu1 %667 }
 0x195   : > { %v707_v39 = vpop.permute.xlu1 %706  ;;  %v670_v40 = vpop.permute.xlu0 %669 }
 0x199   : > { %v745_v41 = vpop.permute.xlu1 %744  ;;  %v709_v42 = vpop.permute.xlu0 %708 }
 0x19d   : > { %v3006_v43 = vpop.permute.xlu1 %782  ;;  %v3008_v44 = vpop.permute.xlu0 %746 }
 0x1a1   : > { %v3010_v45 = vpop.permute.xlu1 %820  ;;  %v3012_v46 = vpop.permute.xlu0 %784 }
 0x1a5   : > { %v3014_v47 = vpop.permute.xlu1 %858  ;;  %v3016_v48 = vpop.permute.xlu0 %822 }
 0x1a9   : > { %v3018_v49 = vpop.permute.xlu1 %896  ;;  %v3020_v50 = vpop.permute.xlu0 %860 }
 0x1ad   : > { %v3022_v52 = vpop.permute.xlu1 %934  ;;  %v3024_v53 = vpop.permute.xlu0 %898 }
 0x1b1   : > { %v674_v55 = vpop.permute.xlu1 %673  ;;  %v3029_v56 = vpop.permute.xlu0 %936 }
 0x1b2   : > { %v682_v59 = vsel %vm681_vm2, %v668_v38, %v674_v55  ;;  %v685_v60 = vsel %vm681_vm2, %v674_v55, %v668_v38  ;;  %v2411_v55 = vld [vmem:[%s4309_s3 + $0x98] sm:$0xff] }
 0x1b3   : > { %v694_v3 = vmul.f32 %v688_v57, %v685_v60  ;;  %v695_v4 = vmul.f32 %v689_v58, %v682_v59 }
 0x1b5   : > { %v713_v61 = vpop.permute.xlu1 %712  ;;  %v676_v62 = vpop.permute.xlu0 %675  ;;  %v700_v22 = vadd.f32 %v694_v3, %v661_v10  ;;  %v701_v23 = vadd.f32 %v695_v4, %v662_v13  ;;  %v2412_v13 = vld [vmem:[%s4309_s3 + $0xa0] sm:$0xff] }
 0x1b6   : > { %v719_v7 = vsel %vm718_vm3, %v707_v39, %v713_v61  ;;  %v722_v8 = vsel %vm718_vm3, %v713_v61, %v707_v39  ;;  %v683_v17 = vsel %vm681_vm2, %v670_v40, %v676_v62  ;;  %v686_v18 = vsel %vm681_vm2, %v676_v62, %v670_v40 }
 0x1b7   : > { %v732_v19 = vmul.f32 %v2398_v5, %v722_v8  ;;  %v733_v20 = vmul.f32 %v2399_v6, %v719_v7  ;;  %v696_v28 = vmul.f32 %v690_v15, %v686_v18  ;;  %v697_v29 = vmul.f32 %v691_v16, %v683_v17  ;;  %v2416_v8 = vld [vmem:[%s4309_s3 + $0xf0] sm:$0xff] }
 0x1b9   : > { %v751_v11 = vpop.permute.xlu1 %750  ;;  %v715_v12 = vpop.permute.xlu0 %714  ;;  %v739_v59 = vadd.f32 %v733_v20, %v701_v23  ;;  %v702_v4 = vadd.f32 %v696_v28, %v663_v14  ;;  %v703_v5 = vadd.f32 %v697_v29, %v664_v21  ;;  %v2413_v14 = vld [vmem:[%s4309_s3 + $0xa8] sm:$0xff] }
 0x1ba   : > { %v757_v26 = vsel %vm756_vm4, %v745_v41, %v751_v11  ;;  %v760_v27 = vsel %vm756_vm4, %v751_v11, %v745_v41  ;;  %v720_v33 = vsel %vm718_vm3, %v709_v42, %v715_v12  ;;  %v723_v38 = vsel %vm718_vm3, %v715_v12, %v709_v42  ;;  %v2410_v41 = vld [vmem:[%s4309_s3 + $0x90] sm:$0xff] }
 0x1bb   : > { %v738_v42 = vadd.f32 %v732_v19, %v700_v22  ;;  %v770_v60 = vmul.f32 %v2404_v24, %v760_v27  ;;  %v771_v61 = vmul.f32 %v2405_v25, %v757_v26  ;;  %v734_v62 = vmul.f32 %v2400_v30, %v723_v38  ;;  %v2422_v24 = vld [vmem:[%s4309_s3 + $0x120] sm:$0xff]  ;;  %v2423_v25 = vld [vmem:[%s4309_s3 + $0x128] sm:$0xff] }
 0x1bc   : > { %v735_v63 = vmul.f32 %v2401_v31, %v720_v33  ;;  %v2418_v38 = vld [vmem:[%s4309_s3 + $0x100] sm:$0xff] }
 0x1bd   : > { %v789_v39 = vpop.permute.xlu1 %788  ;;  %v753_v40 = vpop.permute.xlu0 %752  ;;  %v776_v17 = vadd.f32 %v770_v60, %v738_v42  ;;  %v777_v18 = vadd.f32 %v771_v61, %v739_v59  ;;  %v740_v20 = vadd.f32 %v734_v62, %v702_v4  ;;  %v2428_v60 = vld [vmem:[%s4309_s3 + $0x150] sm:$0xff]  ;;  %v2429_v61 = vld [vmem:[%s4309_s3 + $0x158] sm:$0xff] }
 0x1be   : > { %v795_v57 = vsel %vm794_vm5, %v3006_v43, %v789_v39  ;;  %v798_v58 = vsel %vm794_vm5, %v789_v39, %v3006_v43  ;;  %v2407_v43 = vld [vmem:[%s4309_s3 + $0x78] sm:$0xff]  ;;  %v758_v2 = vsel %vm756_vm4, %v3008_v44, %v753_v40  ;;  %v761_v3 = vsel %vm756_vm4, %v753_v40, %v3008_v44  ;;  %v2419_v39 = vld [vmem:[%s4309_s3 + $0x108] sm:$0xff] }
 0x1bf   : > { %v808_v6 = vmul.f32 %v2410_v41, %v798_v58  ;;  %v809_v7 = vmul.f32 %v2411_v55, %v795_v57  ;;  %v772_v19 = vmul.f32 %v2406_v0, %v761_v3  ;;  %v741_v21 = vadd.f32 %v735_v63, %v703_v5  ;;  %v2425_v3 = vld [vmem:[%s4309_s3 + $0x138] sm:$0xff] }
 0x1c1   : > { %v827_v10 = vpop.permute.xlu1 %826  ;;  %v791_v11 = vpop.permute.xlu0 %790  ;;  %v814_v26 = vadd.f32 %v808_v6, %v776_v17  ;;  %v815_v27 = vadd.f32 %v809_v7, %v777_v18  ;;  %v778_v55 = vadd.f32 %v772_v19, %v740_v20 }
 0x1c2   : > { %v833_v12 = vsel %vm832_vm6, %v3010_v45, %v827_v10  ;;  %v836_v44 = vsel %vm832_vm6, %v827_v10, %v3010_v45  ;;  %v796_v15 = vsel %vm794_vm5, %v3012_v46, %v791_v11  ;;  %v799_v16 = vsel %vm794_vm5, %v791_v11, %v3012_v46 }
 0x1c3   : > { %v773_v45 = vmul.f32 %v2407_v43, %v758_v2  ;;  %v846_v22 = vmul.f32 %v2416_v8, %v833_v12  ;;  %v847_v23 = vmul.f32 %v2417_v9, %v836_v44  ;;  %v810_v28 = vmul.f32 %v2412_v13, %v799_v16  ;;  %v2424_v2 = vld [vmem:[%s4309_s3 + $0x130] sm:$0xff]  ;;  %v2434_v44 = vld [vmem:[%s4309_s3 + $0x180] sm:$0xff] }
 0x1c4   : > { %v811_v46 = vmul.f32 %v2413_v14, %v796_v15  ;;  %v2430_v15 = vld [vmem:[%s4309_s3 + $0x160] sm:$0xff] }
 0x1c5   : > { %v865_v29 = vpop.permute.xlu1 %864  ;;  %v829_v30 = vpop.permute.xlu0 %828  ;;  %v779_v57 = vadd.f32 %v773_v45, %v741_v21  ;;  %v852_v42 = vadd.f32 %v846_v22, %v814_v26  ;;  %v853_v59 = vadd.f32 %v847_v23, %v815_v27  ;;  %v816_v62 = vadd.f32 %v810_v28, %v778_v55 }
 0x1c6   : > { %v871_v31 = vsel %vm870_vm7, %v3014_v47, %v865_v29  ;;  %v874_v33 = vsel %vm870_vm7, %v865_v29, %v3014_v47  ;;  %v834_v40 = vsel %vm832_vm6, %v3016_v48, %v829_v30  ;;  %v837_v41 = vsel %vm832_vm6, %v829_v30, %v3016_v48  ;;  %v2436_v30 = vld [vmem:[%s4309_s3 + $0x190] sm:$0xff] }
 0x1c7   : > { %v884_v58 = vmul.f32 %v2422_v24, %v871_v31  ;;  %v885_v47 = vmul.f32 %v2423_v25, %v874_v33  ;;  %v817_v63 = vadd.f32 %v811_v46, %v779_v57  ;;  %v848_v0 = vmul.f32 %v2418_v38, %v834_v40 }
 0x1c8   : > { %v849_v48 = vmul.f32 %v2419_v39, %v837_v41 }
 0x1c9   : > { %v903_v43 = vpop.permute.xlu1 %902  ;;  %v867_v4 = vpop.permute.xlu0 %866  ;;  %v890_v9 = vadd.f32 %v884_v58, %v852_v42  ;;  %v891_v10 = vadd.f32 %v885_v47, %v853_v59  ;;  %v854_v16 = vadd.f32 %v848_v0, %v816_v62 }
 0x1ca   : > { %v909_v5 = vsel %vm908_vm8, %v3018_v49, %v903_v43  ;;  %v912_v6 = vsel %vm908_vm8, %v903_v43, %v3018_v49  ;;  %v872_v7 = vsel %vm870_vm7, %v3020_v50, %v867_v4  ;;  %v875_v8 = vsel %vm870_vm7, %v867_v4, %v3020_v50  ;;  %v2435_v49 = vld [vmem:[%s4309_s3 + $0x188] sm:$0xff] }
 0x1cb   : > { %v922_v11 = vmul.f32 %v2428_v60, %v909_v5  ;;  %v923_v12 = vmul.f32 %v2429_v61, %v912_v6  ;;  %v886_v13 = vmul.f32 %v2424_v2, %v872_v7  ;;  %v887_v14 = vmul.f32 %v2425_v3, %v875_v8  ;;  %v2431_v50 = vld [vmem:[%s4309_s3 + $0x168] sm:$0xff] }
 0x1cc   : > { %v855_v17 = vadd.f32 %v849_v48, %v817_v63  ;;  %v693_v8 = vld [vmem:[%s4309_s3 + $0x28] sm:$0xff] }
 0x1cd   : > { %v928_v18 = vadd.f32 %v922_v11, %v890_v9  ;;  %v929_v19 = vadd.f32 %v923_v12, %v891_v10  ;;  %v941_v45 = vpop.permute.xlu1 %940  ;;  %v905_v20 = vpop.permute.xlu0 %904  ;;  %v892_v46 = vadd.f32 %v886_v13, %v854_v16  ;;  %v2396_v11 = vld [vmem:[%s4309_s3 + $0xe0] sm:$0xff]  ;;  %v2397_v13 = vld [vmem:[%s4309_s3 + $0xe8] sm:$0xff] }
 0x1ce   : > { %v947_v21 = vsel %vm946_vm9, %v3022_v52, %v941_v45  ;;  %v950_v22 = vsel %vm946_vm9, %v941_v45, %v3022_v52  ;;  %v910_v23 = vsel %vm908_vm8, %v3024_v53, %v905_v20  ;;  %v913_v24 = vsel %vm908_vm8, %v905_v20, %v3024_v53  ;;  %v2437_v52 = vld [vmem:[%s4309_s3 + $0x198] sm:$0xff] }
 0x1cf   : > { %v960_v25 = vmul.f32 %v2434_v44, %v947_v21  ;;  %v961_v26 = vmul.f32 %v2435_v49, %v950_v22  ;;  %v924_v27 = vmul.f32 %v2430_v15, %v910_v23  ;;  %v925_v28 = vmul.f32 %v2431_v50, %v913_v24  ;;  %v2403_v49 = vld [vmem:[%s4309_s3 + $0x58] sm:$0xff] }
 0x1d0   : > { %v893_v29 = vadd.f32 %v887_v14, %v855_v17  ;;  %v2402_v14 = vld [vmem:[%s4309_s3 + $0x50] sm:$0xff]  ;;  %v665_v21 = vmul.f32 %v2396_v11, %v2958_v32  ;;  %v666_v22 = vmul.f32 %v2397_v13, %v2964_v34 }
 0x1d1   : > { %v943_v31 = vpop.permute.xlu0 %942  ;;  %v672_v33 = vpop.permute.xlu1 %671  ;;  %v966_v38 = vadd.f32 %v960_v25, %v928_v18  ;;  %v967_v39 = vadd.f32 %v961_v26, %v929_v19  ;;  %v930_v40 = vadd.f32 %v924_v27, %v892_v46  ;;  %v2408_v18 = vld [vmem:[%s4309_s3 + $0x80] sm:$0xff]  ;;  %v2409_v19 = vld [vmem:[%s4309_s3 + $0x88] sm:$0xff]  ;;  %v2414_v27 = vld [vmem:[%s4309_s3 + $0xb0] sm:$0xff] }
 0x1d2   : > { %v931_v53 = vadd.f32 %v925_v28, %v893_v29  ;;  %v948_v41 = vsel %vm946_vm9, %v3029_v56, %v943_v31  ;;  %v951_v55 = vsel %vm946_vm9, %v943_v31, %v3029_v56  ;;  %v2415_v28 = vld [vmem:[%s4309_s3 + $0xb8] sm:$0xff]  ;;  %v2420_v31 = vld [vmem:[%s4309_s3 + $0x110] sm:$0xff] }
 0x1d3   : > { %v962_v57 = vmul.f32 %v2436_v30, %v948_v41  ;;  %v963_v58 = vmul.f32 %v2437_v52, %v951_v55  ;;  %v3238_v47 = vadd.f32 %v3000_v35, %v966_v38  ;;  %v3241_v42 = vadd.f32 %v3000_v35, %v967_v39 }
 0x1d5   : > { %v711_v59 = vpop.permute.xlu1 %710  ;;  %v678_v60 = vpop.permute.xlu0 %677  ;;  %v996_v61 = vmax.f32 %v3238_v47, 0.0  ;;  %v997_v62 = vmax.f32 %v3241_v42, 0.0  ;;  %v968_v63 = vadd.f32 %v962_v57, %v930_v40  ;;  %v969_v0 = vadd.f32 %v963_v58, %v931_v53  ;;  %v2426_v58 = vld [vmem:[%s4309_s3 + $0x140] sm:$0xff] }
 0x1d6   : > { %v684_v9 = vsel %vm681_vm2, %v672_v33, %v678_v60  ;;  %v687_v10 = vsel %vm681_vm2, %v678_v60, %v672_v33  ;;  %v2421_v33 = vld [vmem:[%s4309_s3 + $0x118] sm:$0xff]  ;;  %v1094_v42 = vld [vmem:[%s4313_s7] sm:$0xff] }
 0x1d7   : > { %v1002_v56 = vadd.f32 %v997_v62, %v996_v61  ;;  %v3250_v48 = vadd.f32 %v3004_v37, %v968_v63  ;;  %v3253_v43 = vadd.f32 %v3004_v37, %v969_v0  ;;  %v692_v37 = vld [vmem:[%s4309_s3 + $0x20] sm:$0xff]  ;;  %v699_v17 = vmul.f32 %v693_v8, %v684_v9 }
 0x1d8   : > { %v698_v16 = vmul.f32 %v692_v37, %v687_v10 }
 0x1d9   : > { %v749_v35 = vpop.permute.xlu1 %748  ;;  %1003 = vadd.xlane.f32.xlu0 %v1002_v56  ;;  %v717_v2 = vpop.permute.xlu0 %716  ;;  %v998_v3 = vmax.f32 %v3250_v48, 0.0  ;;  %v999_v4 = vmax.f32 %v3253_v43, 0.0  ;;  %v705_v34 = vadd.f32 %v699_v17, %v666_v22 }
 0x1da   : > { %v721_v15 = vsel %vm718_vm3, %v711_v59, %v717_v2  ;;  %v724_v50 = vsel %vm718_vm3, %v717_v2, %v711_v59  ;;  %v704_v29 = vadd.f32 %v698_v16, %v665_v21  ;;  %v2427_v59 = vld [vmem:[%s4309_s3 + $0x148] sm:$0xff] }
 0x1db   : > { %v1005_v5 = vadd.f32 %v999_v4, %v998_v3  ;;  %v736_v23 = vmul.f32 %v2402_v14, %v724_v50  ;;  %v737_v24 = vmul.f32 %v2403_v49, %v721_v15  ;;  %v2438_v50 = vld [vmem:[%s4309_s3 + $0x1a0] sm:$0xff]  ;;  %v2439_v16 = vld [vmem:[%s4309_s3 + $0x1a8] sm:$0xff] }
 0x1dd   : > { %v787_v6 = vpop.permute.xlu1 %786  ;;  %v755_v7 = vpop.permute.xlu0 %754  ;;  %1006 = vadd.xlane.f32.xlu1 %v1005_v5  ;;  %v742_v40 = vadd.f32 %v736_v23, %v704_v29  ;;  %v743_v53 = vadd.f32 %v737_v24, %v705_v34 }
 0x1de   : > { %v759_v45 = vsel %vm756_vm4, %v749_v35, %v755_v7  ;;  %v762_v20 = vsel %vm756_vm4, %v755_v7, %v749_v35  ;;  %v2433_v7 = vld [vmem:[%s4309_s3 + $0x178] sm:$0xff] }
 0x1df   : > { %v774_v30 = vmul.f32 %v2408_v18, %v762_v20  ;;  %v775_v52 = vmul.f32 %v2409_v19, %v759_v45 }
 0x1e1   : > { %v825_v12 = vpop.permute.xlu1 %824  ;;  %v793_v44 = vpop.permute.xlu0 %792  ;;  %v780_v0 = vadd.f32 %v774_v30, %v742_v40  ;;  %v781_v56 = vadd.f32 %v775_v52, %v743_v53  ;;  %v1017_v53 = vld [vmem:[%s4310_s4 + $0x10] sm:$0xff] }
 0x1e2   : > { %v797_v46 = vsel %vm794_vm5, %v787_v6, %v793_v44  ;;  %v800_v32 = vsel %vm794_vm5, %v793_v44, %v787_v6  ;;  %v2432_v6 = vld [vmem:[%s4309_s3 + $0x170] sm:$0xff] }
 0x1e3   : > { %v812_v41 = vmul.f32 %v2414_v27, %v800_v32  ;;  %v813_v55 = vmul.f32 %v2415_v28, %v797_v46 }
 0x1e5   : > { %v863_v25 = vpop.permute.xlu1 %862  ;;  %v831_v26 = vpop.permute.xlu0 %830  ;;  %v818_v37 = vadd.f32 %v812_v41, %v780_v0  ;;  %v819_v8 = vadd.f32 %v813_v55, %v781_v56 }
 0x1e6   : > { %v835_v38 = vsel %vm832_vm6, %v825_v12, %v831_v26  ;;  %v838_v39 = vsel %vm832_vm6, %v831_v26, %v825_v12 }
 0x1e7   : > { %v850_v35 = vmul.f32 %v2420_v31, %v835_v38  ;;  %v851_v2 = vmul.f32 %v2421_v33, %v838_v39  ;;  %v1016_v33 = vld [vmem:[%s4310_s4 + $0x8] sm:$0xff] }
 0x1e9   : > { %v869_v57 = vpop.permute.xlu0 %868  ;;  %v901_v5 = vpop.permute.xlu1 %900  ;;  %v856_v13 = vadd.f32 %v850_v35, %v818_v37  ;;  %v857_v14 = vadd.f32 %v851_v2, %v819_v8  ;;  %v1033_v37 = vld [vmem:[#allocation2] sm:$0x1] }
 0x1ea   : > { %v873_v60 = vsel %vm870_vm7, %v863_v25, %v869_v57  ;;  %v876_v63 = vsel %vm870_vm7, %v869_v57, %v863_v25 }
 0x1eb   : > { %v888_v9 = vmul.f32 %v2426_v58, %v873_v60  ;;  %v889_v10 = vmul.f32 %v2427_v59, %v876_v63 }
 0x1ed   : > { %v907_v11 = vpop.permute.xlu0 %906  ;;  %v894_v17 = vadd.f32 %v888_v9, %v856_v13  ;;  %v895_v18 = vadd.f32 %v889_v10, %v857_v14  ;;  %v945_v19 = vpop.permute.xlu1 %944  ;;  %v1049_v14 = vld [vmem:[%s4308_s2 + $0x30] sm:$0xff] }
 0x1ee   : > { %v911_v12 = vsel %vm908_vm8, %v901_v5, %v907_v11  ;;  %v914_v44 = vsel %vm908_vm8, %v907_v11, %v901_v5 }
 0x1ef   : > { %v926_v49 = vmul.f32 %v2432_v6, %v911_v12  ;;  %v927_v15 = vmul.f32 %v2433_v7, %v914_v44  ;;  %v3371_v6 = vshrl.u32 %v679_v51, 7  ;;  %v1036_v12 = vld [vmem:[%s4312_s6] sm:$0xff]  ;;  %v1037_v44 = vld [vmem:[%s4312_s6 + $0x8] sm:$0xff]  ;;  %v1038_v51 = vld [vmem:[%s4312_s6 + $0x10] sm:$0xff] }
 0x1f1   : > { %v939_v45 = vpop.permute.xlu0 %938  ;;  %v932_v22 = vadd.f32 %v926_v49, %v894_v17  ;;  %v933_v23 = vadd.f32 %v927_v15, %v895_v18  ;;  %4363 = vst [vmem:[#allocation13_spill] sm:$0xff] %v3371_v6  ;;  %v4343_v9 = vsub.s32 0, %v3371_v6  ;;  %v1050_v49 = vld [vmem:[%s4308_s2 + $0x38] sm:$0xff]  ;;  %v1051_v15 = vld [vmem:[%s4308_s2 + $0x40] sm:$0xff] }
 0x1f2   : > { %v949_v20 = vsel %vm946_vm9, %v939_v45, %v945_v19  ;;  %v952_v21 = vsel %vm946_vm9, %v945_v19, %v939_v45 }
 0x1f3   : > { %v964_v24 = vmul.f32 %v2438_v50, %v949_v20  ;;  %v965_v25 = vmul.f32 %v2439_v16, %v952_v21 }
 0x1f5   : > { %v970_v26 = vadd.f32 %v964_v24, %v932_v22  ;;  %v971_v27 = vadd.f32 %v965_v25, %v933_v23 }
 0x1f7   : > { %v3350_v28 = vadd.f32 %v3002_v36, %v970_v26  ;;  %v3353_v46 = vadd.f32 %v3002_v36, %v971_v27  ;;  %v1015_v36 = vld [vmem:[%s4310_s4] sm:$0xff] }
 0x1f9   : > { %v1000_v32 = vmax.f32 %v3350_v28, 0.0  ;;  %v1001_v29 = vmax.f32 %v3353_v46, 0.0  ;;  %v1180_v28 = vld [vmem:[%s4314_s8] sm:$0xff] }
 0x1fb   : > { %v1008_v34 = vadd.f32 %v1001_v29, %v1000_v32 }
 0x1fd   : > { %1009 = vadd.xlane.f32.xlu0 %v1008_v34 }
 0x266   : > { %v1004_v52 = vpop.xlane.xlu0 %1003 }
 0x267   : > { %v1012_v38 = vmul.f32 0.00390625, %v1004_v52 }
 0x269   : > { %v1018_v40 = vmul.f32 %v1015_v36, %v1012_v38  ;;  %v1170_v36 = vld [vmem:[%s4308_s2 + $0x48] sm:$0xff] }
 0x26a   : > { %v1007_v30 = vpop.xlane.xlu1 %1006 }
 0x26b   : > { %v1013_v31 = vmul.f32 0.00390625, %v1007_v30  ;;  %v1022_v58 = vsel %vm1021_vm10, %v1018_v40, 0.0 }
 0x26d   : > { %v1019_v39 = vmul.f32 %v1016_v33, %v1013_v31 }
 0x26f   : > { %v1023_v55 = vsel %vm1021_vm10, %v1019_v39, 0.0  ;;  %v514_v39 = vld [vmem:[%s4307_s1 + $0x18] sm:$0xff] }
 0x270   : > { %v1024_v60 = vadd.f32 %v1023_v55, %v1022_v58  ;;  %2391 = vmatmul.mubr.msk.f32.gmra.mrb[6].mxu0 %vm517_vm1, %v514_v39  ;;  %v1189_v55 = vld [vmem:[%s4315_s9 + $0x18] sm:$0xff]  ;;  %v1191_v58 = vld [vmem:[%s4315_s9 + $0x28] sm:$0xff] }
 0x271   : > { %1163 = vmatprep.mubr.f32.mxu0 %v2675_v1 }
 0x28a   : > { %v1010_v41 = vpop.xlane.xlu0 %1009 }
 0x28b   : > { %v1014_v57 = vmul.f32 0.00390625, %v1010_v41  ;;  %v1186_v41 = vld [vmem:[%s4315_s9] sm:$0xff] }
 0x28d   : > { %v1020_v59 = vmul.f32 %v1017_v53, %v1014_v57  ;;  %v1187_v53 = vld [vmem:[%s4315_s9 + $0x8] sm:$0xff]  ;;  %v1188_v57 = vld [vmem:[%s4315_s9 + $0x10] sm:$0xff] }
 0x28f   : > { %v1025_v63 = vsel %vm1021_vm10, %v1020_v59, 0.0  ;;  %v1190_v59 = vld [vmem:[%s4315_s9 + $0x20] sm:$0xff] }
 0x290   : > { %v1026_v0 = vadd.f32 %v1025_v63, %v1024_v60  ;;  %v1963_v60 = vld [vmem:[%s4315_s9 + $0x38] sm:$0xff]  ;;  %v1962_v63 = vld [vmem:[%s4315_s9 + $0x30] sm:$0xff] }
 0x292   : > { %v1027_v56 = vrot.slane %v1026_v0, 4 }
 0x294   : > { %v1028_v35 = vadd.f32 %v1027_v56, %v1026_v0  ;;  %v1965_v0 = vld [vmem:[%s4315_s9 + $0x48] sm:$0xff]  ;;  %v1964_v56 = vld [vmem:[%s4315_s9 + $0x40] sm:$0xff] }
 0x296   : > { %v1029_v2 = vrot.slane %v1028_v35, 2 }
 0x298   : > { %v1030_v5 = vadd.f32 %v1029_v2, %v1028_v35  ;;  %v1967_v35 = vld [vmem:[%s4315_s9 + $0x58] sm:$0xff]  ;;  %v1966_v2 = vld [vmem:[%s4315_s9 + $0x50] sm:$0xff] }
 0x29a   : > { %v1031_v7 = vrot.slane %v1030_v5, 1 }
 0x29c   : > { %v1032_v8 = vadd.f32 %v1031_v7, %v1030_v5 }
 0x29e   : > { %v1034_v10 = vadd.f32 %v1033_v37, %v1032_v8 }
 0x2a0   : > { %v1035_v11 = vmax.f32 %v1034_v10, 0.0 }
 0x2a2   : > { %v1042_v13 = vrot.slane %v1035_v11, %v4343_v9  ;;  %v1489_v9 = vld [vmem:[#allocation3 + $0x68] sm:$0xff] }
 0x2a4   : > { %v1043_v50 = vmul.f32 %v1042_v13, %v1036_v12  ;;  %v1044_v16 = vmul.f32 %v1042_v13, %v1037_v44  ;;  %v1045_v17 = vmul.f32 %v1042_v13, %v1038_v51 }
 0x2a6   : > { %v1052_v18 = vadd.f32 %v1049_v14, %v1043_v50  ;;  %v1053_v19 = vadd.f32 %v1050_v49, %v1044_v16  ;;  %v1054_v45 = vadd.f32 %v1051_v15, %v1045_v17  ;;  %v1183_v14 = vld [vmem:[%s4314_s8 + $0x18] sm:$0xff]  ;;  %v1184_v49 = vld [vmem:[%s4314_s8 + $0x20] sm:$0xff]  ;;  %v1185_v15 = vld [vmem:[%s4314_s8 + $0x28] sm:$0xff] }
 0x2a8   : > { %v1055_v20 = vsub.f32 0.0, %v1052_v18  ;;  %v1056_v21 = vsub.f32 0.0, %v1053_v19  ;;  %v1057_v22 = vsub.f32 0.0, %v1054_v45 }
 0x2aa   : > { %v1058_v23 = vmul.f32 1.442695, %v1055_v20  ;;  %v1060_v24 = vmul.f32 1.442695, %v1056_v21  ;;  %v1062_v25 = vmul.f32 1.442695, %v1057_v22 }
 0x2ac   : > { %2540 = vpow2.f32 %v1058_v23 }
 0x2ad   : > { %2542 = vpow2.f32 %v1060_v24 }
 0x2ae   : > { %2544 = vpow2.f32 %v1062_v25 }
 0x2b6   : > { %v2541_v26 = vpop.eup %2540 }
 0x2b7   : > { %v2543_v27 = vpop.eup %2542  ;;  %v1064_v34 = vadd.f32 1.0, %v2541_v26 }
 0x2b8   : > { %v2545_v30 = vpop.eup %2544  ;;  %v1065_v52 = vadd.f32 1.0, %v2543_v27 }
 0x2b9   : > { %2546 = vrcp.f32 %v1064_v34  ;;  %v1066_v31 = vadd.f32 1.0, %v2545_v30 }
 0x2ba   : > { %2548 = vrcp.f32 %v1065_v52 }
 0x2bb   : > { %2550 = vrcp.f32 %v1066_v31 }
 0x2c3   : > { %v2547_v33 = vpop.eup %2546 }
 0x2c4   : > { %v2549_v38 = vpop.eup %2548  ;;  %1075 = vperm.xlu0 %2537, %v2547_v33  }
 0x2c5   : > { %1080 = vperm.xlu1 %2538, %v2549_v38   ;;  %v2551_v40 = vpop.eup %2550 }
 0x2c8   : > { %1173 = vperm.xlu0 %2537, %v1170_v36  }
 0x2c9   : > { %1085 = vperm.xlu1 %2538, %v2551_v40  }
 0x2cc   : > { %1199 = vperm.xlu0 %2537, %v1187_v53  }
 0x2cd   : > { %1194 = vperm.xlu1 %2538, %v1186_v41  }
 0x2d0   : > { %1209 = vperm.xlu0 %2537, %v1189_v55  }
 0x2d1   : > { %1204 = vperm.xlu1 %2538, %v1188_v57  }
 0x2d4   : > { %1219 = vperm.xlu0 %2537, %v1191_v58  }
 0x2d5   : > { %1214 = vperm.xlu1 %2538, %v1190_v59  }
 0x2d8   : > { %1975 = vperm.xlu0 %2537, %v1963_v60  }
 0x2d9   : > { %1970 = vperm.xlu1 %2538, %v1962_v63  }
 0x2dc   : > { %1985 = vperm.xlu0 %2537, %v1965_v0  }
 0x2dd   : > { %1980 = vperm.xlu1 %2538, %v1964_v56  }
 0x2e0   : > { %1995 = vperm.xlu0 %2537, %v1967_v35  }
 0x2e1   : > { %1990 = vperm.xlu1 %2538, %v1966_v2  }
 0x343   : > { %v1076_v5 = vpop.permute.xlu0 %1075 }
 0x344   : > { %v1081_v7 = vpop.permute.xlu1 %1080  ;;  %v1088_v37 = vmul.f32 %v1076_v5, %v996_v61  ;;  %v1089_v8 = vmul.f32 %v1076_v5, %v997_v62 }
 0x345   : > { %v1090_v10 = vmul.f32 %v1081_v7, %v998_v3  ;;  %v1091_v11 = vmul.f32 %v1081_v7, %v999_v4 }
 0x347   : > { %v2457_v12 = vpack.c.bf16 %v1090_v10, %v1088_v37  ;;  %v2455_v44 = vpack.c.bf16 %v1091_v11, %v1089_v8  ;;  %v1174_v61 = vpop.permute.xlu0 %1173 }
 0x348   : > { %v1086_v51 = vpop.permute.xlu1 %1085 }
 0x349   : > { %v1093_v13 = vmul.f32 %v1086_v51, %v1001_v29  ;;  %2456 = vmatprep.subr.bf16.mxu0 %v2455_v44  ;;  %v1092_v47 = vmul.f32 %v1086_v51, %v1000_v32  ;;  %v1181_v32 = vld [vmem:[%s4314_s8 + $0x8] sm:$0xff]  ;;  %v1182_v29 = vld [vmem:[%s4314_s8 + $0x10] sm:$0xff] }
 0x34a   : > { %2458 = vmatpush1.bf16.msra.mxu0 %v2457_v12 }
 0x34b   : > { %1103 = vmatprep.subr.mxu0 %v1093_v13  ;;  %v1200_v16 = vpop.permute.xlu0 %1199 }
 0x34c   : > { %v1195_v50 = vpop.permute.xlu1 %1194 }
 0x34e   : > { %1104 = vmatpush1.msra.mxu0 %v1092_v47 }
 0x34f   : > { %2440 = vmatmul.mubr.msk.f32.vlgmr.msra.gmra.mrb[6].mxu0 %vm1095_vm11, %v1094_v42  ;;  %v1210_v57 = vpop.permute.xlu0 %1209 }
 0x350   : > { %1305 = vmatprep.mubr.f32.mxu0 %v2675_v1  ;;  %v1205_v39 = vpop.permute.xlu1 %1204 }
 0x353   : > { %v3605_v60 = vpop.permute.xlu0 %1219 }
 0x354   : > { %v1215_v59 = vpop.permute.xlu1 %1214 }
 0x357   : > { %v3620_v35 = vpop.permute.xlu0 %1975 }
 0x358   : > { %v3618_v56 = vpop.permute.xlu1 %1970 }
 0x35b   : > { %v3630_v7 = vpop.permute.xlu0 %1985 }
 0x35c   : > { %v3628_v5 = vpop.permute.xlu1 %1980  ;;  %4373 = vst [vmem:[#allocation16_spill] sm:$0xff] %v3630_v7  ;;  %v1564_v7 = vld [vmem:[#allocation3 + $0xd8] sm:$0xff] }
 0x35f   : > { %v3642_v8 = vpop.permute.xlu0 %1995 }
 0x360   : > { %v3640_v37 = vpop.permute.xlu1 %1990  ;;  %4375 = vst [vmem:[#allocation18_spill] sm:$0xff] %v3642_v8 }
 0x361   : > { %4374 = vst [vmem:[#allocation17_spill] sm:$0xff] %v3640_v37  ;;  %v1490_v37 = vld [vmem:[#allocation3 + $0x70] sm:$0xff] }
 0x422   : > { %v1165_v62 = vpop.f32.mrb[6].mxu0 }
 0x423   : > { %v1176_v48 = vadd.f32 %v1174_v61, %v1165_v62  ;;  %v1167_v43 = vpop.f32.mrb[7].mxu0 }
 0x424   : > { %v1177_v3 = vadd.f32 %v1174_v61, %v1167_v43 }
 0x425   : > { %v3456_v46 = vmax.f32 %v1176_v48, 0.0 }
 0x426   : > { %v3454_v4 = vmax.f32 %v1177_v3, 0.0 }
 0x427   : > { %4365 = vst [vmem:[#allocation15_spill] sm:$0xff] %v3456_v46 }
 0x428   : > { %4364 = vst [vmem:[#allocation14_spill] sm:$0xff] %v3454_v4  ;;  %1241 = vmatprep.subr.mxu0 %v3454_v4  ;;  %2471 = vmatprep.subr.mxu1 %v3454_v4 }
 0x429   : > { %1242 = vmatpush1.msra.mxu0 %v3456_v46  ;;  %2472 = vmatpush1.msra.mxu1 %v3456_v46 }
 0x42a   : > { %2441 = vmatmul.mubr.msk.f32.vlgmr.msra.gmra.mrb[8].mxu0 %vm1222_vm12, %v1180_v28  ;;  %2442 = vmatmul.mubr.msk.f32.vlgmr.msra.gmra.mrb[0].mxu1 %vm1222_vm12, %v1181_v32 }
 0x42b   : > { %1317 = vmatprep.mubr.f32.mxu1 %v2675_v1 }
 0x42e   : > { %2443 = vmatmul.mubr.msk.f32.gmra.mrb[2].mxu1 %vm1222_vm12, %v1182_v29 }
 0x42f   : > { %1323 = vmatprep.mubr.f32.mxu1 %v2675_v1 }
 0x432   : > { %2444 = vmatmul.mubr.msk.f32.gmra.mrb[4].mxu1 %vm1222_vm12, %v1183_v14 }
 0x433   : > { %1329 = vmatprep.mubr.f32.mxu1 %v2675_v1 }
 0x436   : > { %2445 = vmatmul.mubr.msk.f32.gmra.mrb[6].mxu1 %vm1222_vm12, %v1184_v49 }
 0x437   : > { %1335 = vmatprep.mubr.f32.mxu1 %v2675_v1 }
 0x43a   : > { %2446 = vmatmul.mubr.msk.f32.gmra.mrb[8].mxu1 %vm1222_vm12, %v1185_v15 }
 0x43b   : > { %2272 = vmatprep.mubr.f32.mxu1 %v2675_v1 }
 0x4fd   : > { %v1307_v17 = vpop.f32.mrb[8].mxu0  ;;  %v1313_v18 = vpop.f32.mrb[0].mxu1 }
 0x4fe   : > { %v1308_v19 = vadd.f32 %v1307_v17, %v1195_v50  ;;  %v1314_v45 = vadd.f32 %v1313_v18, %v1200_v16  ;;  %v1309_v20 = vpop.f32.mrb[9].mxu0  ;;  %v1315_v21 = vpop.f32.mrb[1].mxu1 }
 0x4ff   : > { %v1310_v31 = vadd.f32 %v1309_v20, %v1195_v50  ;;  %v1316_v33 = vadd.f32 %v1315_v21, %v1200_v16 }
 0x500   : > { %v3491_v22 = vmax.f32 %v1308_v19, 0.0  ;;  %v3493_v23 = vmax.f32 %v1314_v45, 0.0 }
 0x501   : > { %v1319_v24 = vpop.f32.mrb[2].mxu1  ;;  %v3537_v38 = vmax.f32 %v1310_v31, 0.0  ;;  %v3539_v36 = vmax.f32 %v1316_v33, 0.0 }
 0x502   : > { %v1321_v25 = vpop.f32.mrb[3].mxu1  ;;  %1379 = vrot.lane.b32.xlu1 %v3491_v22, %s2677_s30  ;;  %1381 = vrot.lane.b32.xlu0 %v3493_v23, %s2677_s30  ;;  %v1320_v40 = vadd.f32 %v1319_v24, %v1205_v39 }
 0x503   : > { %v1322_v41 = vadd.f32 %v1321_v25, %v1205_v39 }
 0x504   : > { %v3573_v53 = vmax.f32 %v1320_v40, 0.0  ;;  %v1415_v40 = vld [vmem:[#allocation3] sm:$0xff] }
 0x505   : > { %v1325_v1 = vpop.f32.mrb[4].mxu1  ;;  %v3579_v55 = vmax.f32 %v1322_v41, 0.0  ;;  %v1416_v41 = vld [vmem:[#allocation3 + $0x8] sm:$0xff] }
 0x506   : > { %v3499_v26 = vpop.f32.mrb[5].mxu1  ;;  %1451 = vrot.lane.b32.xlu1 %v3491_v22, %s4366_s19  ;;  %1453 = vrot.lane.b32.xlu0 %v3493_v23, %s4366_s19  ;;  %v1326_v58 = vadd.f32 %v1325_v1, %v1210_v57 }
 0x507   : > { %v1328_v0 = vadd.f32 %v3499_v26, %v1210_v57 }
 0x508   : > { %v3611_v63 = vmax.f32 %v1326_v58, 0.0 }
 0x509   : > { %v3505_v27 = vpop.f32.mrb[6].mxu1  ;;  %v3622_v2 = vmax.f32 %v1328_v0, 0.0  ;;  %v1417_v0 = vld [vmem:[#allocation3 + $0x10] sm:$0xff] }
 0x50a   : > { %v3507_v34 = vpop.f32.mrb[7].mxu1  ;;  %1524 = vrot.lane.b32.xlu1 %v3491_v22, %s4367_s27  ;;  %1526 = vrot.lane.b32.xlu0 %v3493_v23, %s4367_s27  ;;  %v1332_v51 = vadd.f32 %v3505_v27, %v1215_v59 }
 0x50b   : > { %v1334_v48 = vadd.f32 %v3507_v34, %v1215_v59  ;;  %v1355_v59 = vld [vmem:[#allocation3 + $0x180] sm:$0xff] }
 0x50c   : > { %v3673_v42 = vmax.f32 %v1332_v51, 0.0  ;;  %v1418_v51 = vld [vmem:[#allocation3 + $0x18] sm:$0xff] }
 0x50d   : > { %v3513_v30 = vpop.f32.mrb[8].mxu1  ;;  %v3692_v28 = vmax.f32 %v1334_v48, 0.0 }
 0x50e   : > { %v3515_v52 = vpop.f32.mrb[9].mxu1  ;;  %1597 = vrot.lane.b32.xlu1 %v3491_v22, %s4368_s24  ;;  %1599 = vrot.lane.b32.xlu0 %v3493_v23, %s4368_s24  ;;  %4376 = vst [vmem:[#allocation19_spill] sm:$0xff] %v3673_v42  ;;  %v1338_v45 = vadd.f32 %v3513_v30, %v3605_v60 }
 0x50f   : > { %4377 = vst [vmem:[#allocation20_spill] sm:$0xff] %v3692_v28  ;;  %v1340_v26 = vadd.f32 %v3515_v52, %v3605_v60  ;;  %v1356_v60 = vld [vmem:[#allocation3 + $0x188] sm:$0xff] }
 0x510   : > { %v3734_v24 = vmax.f32 %v1338_v45, 0.0 }
 0x511   : > { %v3754_v30 = vmax.f32 %v1340_v26, 0.0 }
 0x512   : > { %1670 = vrot.lane.b32.xlu1 %v3491_v22, %s4369_s26  ;;  %1672 = vrot.lane.b32.xlu0 %v3493_v23, %s4369_s26 }
 0x516   : > { %1743 = vrot.lane.b32.xlu1 %v3491_v22, %s4370_s28  ;;  %1745 = vrot.lane.b32.xlu0 %v3493_v23, %s4370_s28 }
 0x51a   : > { %1816 = vrot.lane.b32.xlu1 %v3491_v22, %s4371_s25  ;;  %1818 = vrot.lane.b32.xlu0 %v3493_v23, %s4371_s25 }
 0x51e   : > { %1889 = vrot.lane.b32.xlu1 %v3491_v22, %s4372_s17  ;;  %1891 = vrot.lane.b32.xlu0 %v3493_v23, %s4372_s17 }
 0x522   : > { %1391 = vrot.lane.b32.xlu1 %v3537_v38, %s2677_s30  ;;  %1393 = vrot.lane.b32.xlu0 %v3539_v36, %s2677_s30 }
 0x526   : > { %1463 = vrot.lane.b32.xlu1 %v3537_v38, %s4366_s19  ;;  %1465 = vrot.lane.b32.xlu0 %v3539_v36, %s4366_s19 }
 0x52a   : > { %1536 = vrot.lane.b32.xlu1 %v3537_v38, %s4367_s27  ;;  %1538 = vrot.lane.b32.xlu0 %v3539_v36, %s4367_s27 }
 0x52e   : > { %1609 = vrot.lane.b32.xlu1 %v3537_v38, %s4368_s24  ;;  %1611 = vrot.lane.b32.xlu0 %v3539_v36, %s4368_s24 }
 0x532   : > { %1682 = vrot.lane.b32.xlu1 %v3537_v38, %s4369_s26  ;;  %1684 = vrot.lane.b32.xlu0 %v3539_v36, %s4369_s26 }
 0x536   : > { %1755 = vrot.lane.b32.xlu1 %v3537_v38, %s4370_s28  ;;  %1757 = vrot.lane.b32.xlu0 %v3539_v36, %s4370_s28 }
 0x53a   : > { %1828 = vrot.lane.b32.xlu1 %v3537_v38, %s4371_s25  ;;  %1830 = vrot.lane.b32.xlu0 %v3539_v36, %s4371_s25 }
 0x53e   : > { %1901 = vrot.lane.b32.xlu1 %v3537_v38, %s4372_s17  ;;  %1903 = vrot.lane.b32.xlu0 %v3539_v36, %s4372_s17 }
 0x542   : > { %1383 = vrot.lane.b32.xlu1 %v3573_v53, %s2677_s30  ;;  %1893 = vrot.lane.b32.xlu0 %v3573_v53, %s4372_s17 }
 0x546   : > { %1455 = vrot.lane.b32.xlu1 %v3573_v53, %s4366_s19  ;;  %1395 = vrot.lane.b32.xlu0 %v3579_v55, %s2677_s30 }
 0x54a   : > { %1528 = vrot.lane.b32.xlu1 %v3573_v53, %s4367_s27  ;;  %1467 = vrot.lane.b32.xlu0 %v3579_v55, %s4366_s19 }
 0x54e   : > { %1601 = vrot.lane.b32.xlu1 %v3573_v53, %s4368_s24  ;;  %1540 = vrot.lane.b32.xlu0 %v3579_v55, %s4367_s27 }
 0x552   : > { %1674 = vrot.lane.b32.xlu1 %v3573_v53, %s4369_s26  ;;  %1613 = vrot.lane.b32.xlu0 %v3579_v55, %s4368_s24 }
 0x556   : > { %1747 = vrot.lane.b32.xlu1 %v3573_v53, %s4370_s28  ;;  %1686 = vrot.lane.b32.xlu0 %v3579_v55, %s4369_s26 }
 0x55a   : > { %1820 = vrot.lane.b32.xlu1 %v3573_v53, %s4371_s25  ;;  %1759 = vrot.lane.b32.xlu0 %v3579_v55, %s4370_s28 }
 0x55e   : > { %1905 = vrot.lane.b32.xlu1 %v3579_v55, %s4372_s17  ;;  %1832 = vrot.lane.b32.xlu0 %v3579_v55, %s4371_s25 }
 0x562   : > { %1822 = vrot.lane.b32.xlu0 %v3611_v63, %s4371_s25  ;;  %1385 = vrot.lane.b32.xlu1 %v3611_v63, %s2677_s30 }
 0x566   : > { %1397 = vrot.lane.b32.xlu0 %v3622_v2, %s2677_s30  ;;  %1457 = vrot.lane.b32.xlu1 %v3611_v63, %s4366_s19 }
 0x56a   : > { %1469 = vrot.lane.b32.xlu0 %v3622_v2, %s4366_s19  ;;  %1530 = vrot.lane.b32.xlu1 %v3611_v63, %s4367_s27 }
 0x56e   : > { %1542 = vrot.lane.b32.xlu0 %v3622_v2, %s4367_s27  ;;  %1603 = vrot.lane.b32.xlu1 %v3611_v63, %s4368_s24 }
 0x572   : > { %1615 = vrot.lane.b32.xlu0 %v3622_v2, %s4368_s24  ;;  %1676 = vrot.lane.b32.xlu1 %v3611_v63, %s4369_s26 }
 0x574   : > { %v3648_v10 = vpop.permute.xlu1 %1379  ;;  %v3650_v11 = vpop.permute.xlu0 %1381 }
 0x576   : > { %1688 = vrot.lane.b32.xlu0 %v3622_v2, %s4369_s26  ;;  %1749 = vrot.lane.b32.xlu1 %v3611_v63, %s4370_s28 }
 0x578   : > { %v3656_v12 = vpop.permute.xlu1 %1451  ;;  %v3658_v44 = vpop.permute.xlu0 %1453 }
 0x57a   : > { %1761 = vrot.lane.b32.xlu0 %v3622_v2, %s4370_s28  ;;  %1895 = vrot.lane.b32.xlu1 %v3611_v63, %s4372_s17 }
 0x57c   : > { %v3665_v13 = vpop.permute.xlu1 %1524  ;;  %v3667_v47 = vpop.permute.xlu0 %1526 }
 0x57e   : > { %1907 = vrot.lane.b32.xlu0 %v3622_v2, %s4372_s17  ;;  %1834 = vrot.lane.b32.xlu1 %v3622_v2, %s4371_s25 }
 0x580   : > { %v3675_v61 = vpop.permute.xlu1 %1597  ;;  %v3677_v62 = vpop.permute.xlu0 %1599 }
 0x582   : > { %1751 = vrot.lane.b32.xlu0 %v3673_v42, %s4370_s28  ;;  %1387 = vrot.lane.b32.xlu1 %v3673_v42, %s2677_s30 }
 0x584   : > { %v3684_v43 = vpop.permute.xlu1 %1670  ;;  %v3686_v3 = vpop.permute.xlu0 %1672 }
 0x586   : > { %1897 = vrot.lane.b32.xlu0 %v3673_v42, %s4372_s17  ;;  %1459 = vrot.lane.b32.xlu1 %v3673_v42, %s4366_s19 }
 0x588   : > { %v3694_v32 = vpop.permute.xlu1 %1743  ;;  %v3696_v29 = vpop.permute.xlu0 %1745 }
 0x58a   : > { %1399 = vrot.lane.b32.xlu0 %v3692_v28, %s2677_s30  ;;  %1532 = vrot.lane.b32.xlu1 %v3673_v42, %s4367_s27 }
 0x58c   : > { %v3702_v14 = vpop.permute.xlu1 %1816  ;;  %v3704_v49 = vpop.permute.xlu0 %1818 }
 0x58e   : > { %1471 = vrot.lane.b32.xlu0 %v3692_v28, %s4366_s19  ;;  %1605 = vrot.lane.b32.xlu1 %v3673_v42, %s4368_s24 }
 0x590   : > { %v3710_v15 = vpop.permute.xlu1 %1889  ;;  %v3712_v50 = vpop.permute.xlu0 %1891 }
 0x592   : > { %1544 = vrot.lane.b32.xlu0 %v3692_v28, %s4367_s27  ;;  %1678 = vrot.lane.b32.xlu1 %v3673_v42, %s4369_s26 }
 0x594   : > { %v1392_v16 = vpop.permute.xlu1 %1391  ;;  %v1394_v17 = vpop.permute.xlu0 %1393 }
 0x595   : > { %v1403_v57 = vsel %vm681_vm2, %v3648_v10, %v1392_v16  ;;  %v1409_v58 = vsel %vm681_vm2, %v1392_v16, %v3648_v10  ;;  %v1404_v48 = vsel %vm681_vm2, %v3650_v11, %v1394_v17  ;;  %v1410_v45 = vsel %vm681_vm2, %v1394_v17, %v3650_v11  ;;  %v1488_v16 = vld [vmem:[#allocation3 + $0x60] sm:$0xff] }
 0x596   : > { %1617 = vrot.lane.b32.xlu0 %v3692_v28, %s4368_s24  ;;  %1824 = vrot.lane.b32.xlu1 %v3673_v42, %s4371_s25  ;;  %v1427_v26 = vmul.f32 %v1415_v40, %v1409_v58  ;;  %v1428_v10 = vmul.f32 %v1416_v41, %v1403_v57  ;;  %v1368_v11 = vmul.f32 %v1356_v60, %v3537_v38  ;;  %v1357_v40 = vld [vmem:[#allocation3 + $0x190] sm:$0xff]  ;;  %v1358_v41 = vld [vmem:[#allocation3 + $0x198] sm:$0xff] }
 0x597   : > { %v1367_v17 = vmul.f32 %v1355_v59, %v3491_v22  ;;  %v1429_v57 = vmul.f32 %v1417_v0, %v1410_v45  ;;  %v1430_v58 = vmul.f32 %v1418_v51, %v1404_v48  ;;  %v1561_v22 = vld [vmem:[#allocation3 + $0xc0] sm:$0xff]  ;;  %v1562_v59 = vld [vmem:[#allocation3 + $0xc8] sm:$0xff] }
 0x598   : > { %v1464_v18 = vpop.permute.xlu1 %1463  ;;  %v1466_v19 = vpop.permute.xlu0 %1465 }
 0x599   : > { %v1475_v4 = vsel %vm718_vm3, %v3656_v12, %v1464_v18  ;;  %v1481_v46 = vsel %vm718_vm3, %v1464_v18, %v3656_v12  ;;  %v1476_v42 = vsel %vm718_vm3, %v3658_v44, %v1466_v19  ;;  %v1482_v12 = vsel %vm718_vm3, %v1466_v19, %v3658_v44 }
 0x59a   : > { %1690 = vrot.lane.b32.xlu0 %v3692_v28, %s4369_s26  ;;  %1763 = vrot.lane.b32.xlu1 %v3692_v28, %s4370_s28  ;;  %v1500_v38 = vmul.f32 %v1488_v16, %v1481_v46  ;;  %v1501_v18 = vmul.f32 %v1489_v9, %v1475_v4  ;;  %v1439_v51 = vadd.f32 %v1427_v26, %v1367_v17  ;;  %v1563_v16 = vld [vmem:[#allocation3 + $0xd0] sm:$0xff]  ;;  %v1634_v17 = vld [vmem:[#allocation3 + $0x120] sm:$0xff] }
 0x59b   : > { %v1440_v44 = vadd.f32 %v1428_v10, %v1368_v11  ;;  %v1369_v19 = vmul.f32 %v1357_v40, %v3493_v23  ;;  %v1370_v46 = vmul.f32 %v1358_v41, %v3539_v36  ;;  %v1502_v48 = vmul.f32 %v1490_v37, %v1482_v12  ;;  %v1635_v40 = vld [vmem:[#allocation3 + $0x128] sm:$0xff] }
 0x59c   : > { %v1537_v20 = vpop.permute.xlu1 %1536  ;;  %v3728_v21 = vpop.permute.xlu0 %1538 }
 0x59d   : > { %v1548_v60 = vsel %vm756_vm4, %v3665_v13, %v1537_v20  ;;  %v1554_v0 = vsel %vm756_vm4, %v1537_v20, %v3665_v13  ;;  %v1549_v13 = vsel %vm756_vm4, %v3667_v47, %v3728_v21  ;;  %v1555_v23 = vsel %vm756_vm4, %v3728_v21, %v3667_v47 }
 0x59e   : > { %1836 = vrot.lane.b32.xlu0 %v3692_v28, %s4371_s25  ;;  %1909 = vrot.lane.b32.xlu1 %v3692_v28, %s4372_s17  ;;  %v1491_v28 = vld [vmem:[#allocation3 + $0x78] sm:$0xff]  ;;  %v1573_v20 = vmul.f32 %v1561_v22, %v1554_v0  ;;  %v1574_v36 = vmul.f32 %v1562_v59, %v1548_v60  ;;  %v1441_v26 = vadd.f32 %v1429_v57, %v1369_v19 }
 0x59f   : > { %v1503_v45 = vmul.f32 %v1491_v28, %v1476_v42  ;;  %v1442_v37 = vadd.f32 %v1430_v58, %v1370_v46  ;;  %v1512_v42 = vadd.f32 %v1500_v38, %v1439_v51  ;;  %v1513_v28 = vadd.f32 %v1501_v18, %v1440_v44  ;;  %v1636_v38 = vld [vmem:[#allocation3 + $0x130] sm:$0xff]  ;;  %v1637_v18 = vld [vmem:[#allocation3 + $0x138] sm:$0xff] }
 0x5a0   : > { %v3736_v25 = vpop.permute.xlu1 %1609  ;;  %v3738_v1 = vpop.permute.xlu0 %1611  ;;  %v1575_v10 = vmul.f32 %v1563_v16, %v1555_v23  ;;  %v1576_v11 = vmul.f32 %v1564_v7, %v1549_v13  ;;  %v1514_v58 = vadd.f32 %v1502_v48, %v1441_v26  ;;  %v1359_v13 = vld [vmem:[#allocation3 + $0x1a0] sm:$0xff]  ;;  %v1360_v23 = vld [vmem:[#allocation3 + $0x1a8] sm:$0xff] }
 0x5a1   : > { %v1621_v47 = vsel %vm794_vm5, %v3675_v61, %v3736_v25  ;;  %v1627_v21 = vsel %vm794_vm5, %v3736_v25, %v3675_v61  ;;  %v1515_v12 = vadd.f32 %v1503_v45, %v1442_v37  ;;  %v1622_v7 = vsel %vm794_vm5, %v3677_v62, %v3738_v1  ;;  %v1707_v61 = vld [vmem:[#allocation3 + $0x1e0] sm:$0xff]  ;;  %v1708_v25 = vld [vmem:[#allocation3 + $0x1e8] sm:$0xff] }
 0x5a2   : > { %1680 = vrot.lane.b32.xlu0 %v3734_v24, %s4369_s26  ;;  %1389 = vrot.lane.b32.xlu1 %v3734_v24, %s2677_s30  ;;  %v1628_v22 = vsel %vm794_vm5, %v3738_v1, %v3677_v62  ;;  %v1585_v59 = vadd.f32 %v1573_v20, %v1512_v42  ;;  %v1586_v60 = vadd.f32 %v1574_v36, %v1513_v28  ;;  %v1709_v62 = vld [vmem:[#allocation3 + $0x1f0] sm:$0xff]  ;;  %v1710_v1 = vld [vmem:[#allocation3 + $0x1f8] sm:$0xff]  ;;  %v1780_v42 = vld [vmem:[#allocation3 + $0x240] sm:$0xff] }
 0x5a3   : > { %v1646_v44 = vmul.f32 %v1634_v17, %v1627_v21  ;;  %v1647_v19 = vmul.f32 %v1635_v40, %v1621_v47  ;;  %v1648_v45 = vmul.f32 %v1636_v38, %v1628_v22  ;;  %v1649_v16 = vmul.f32 %v1637_v18, %v1622_v7  ;;  %v1781_v28 = vld [vmem:[#allocation3 + $0x248] sm:$0xff]  ;;  %v1782_v17 = vld [vmem:[#allocation3 + $0x250] sm:$0xff]  ;;  %v1783_v40 = vld [vmem:[#allocation3 + $0x258] sm:$0xff] }
 0x5a4   : > { %v3746_v27 = vpop.permute.xlu1 %1682  ;;  %v3748_v34 = vpop.permute.xlu0 %1684 }
 0x5a5   : > { %v1694_v0 = vsel %vm832_vm6, %v3684_v43, %v3746_v27  ;;  %v1700_v51 = vsel %vm832_vm6, %v3746_v27, %v3684_v43  ;;  %v1695_v46 = vsel %vm832_vm6, %v3686_v3, %v3748_v34  ;;  %v1701_v48 = vsel %vm832_vm6, %v3748_v34, %v3686_v3 }
 0x5a6   : > { %1826 = vrot.lane.b32.xlu0 %v3734_v24, %s4371_s25  ;;  %1461 = vrot.lane.b32.xlu1 %v3734_v24, %s4366_s19  ;;  %v1587_v43 = vadd.f32 %v1575_v10, %v1514_v58  ;;  %v1588_v27 = vadd.f32 %v1576_v11, %v1515_v12  ;;  %v1719_v26 = vmul.f32 %v1707_v61, %v1694_v0 }
 0x5a7   : > { %v1720_v37 = vmul.f32 %v1708_v25, %v1700_v51  ;;  %v1721_v10 = vmul.f32 %v1709_v62, %v1695_v46  ;;  %v1722_v11 = vmul.f32 %v1710_v1, %v1701_v48  ;;  %v1658_v58 = vadd.f32 %v1646_v44, %v1585_v59  ;;  %v1420_v51 = vld [vmem:[#allocation3 + $0x28] sm:$0xff]  ;;  %v1855_v62 = vld [vmem:[#allocation3 + $0x2b0] sm:$0xff]  ;;  %v1856_v1 = vld [vmem:[#allocation3 + $0x2b8] sm:$0xff] }
 0x5a8   : > { %v3756_v31 = vpop.permute.xlu1 %1755  ;;  %v3758_v33 = vpop.permute.xlu0 %1757  ;;  %v1659_v12 = vadd.f32 %v1647_v19, %v1586_v60  ;;  %v1660_v38 = vadd.f32 %v1648_v45, %v1587_v43  ;;  %v1661_v18 = vadd.f32 %v1649_v16, %v1588_v27  ;;  %v1492_v43 = vld [vmem:[#allocation3 + $0x80] sm:$0xff]  ;;  %v1493_v27 = vld [vmem:[#allocation3 + $0x88] sm:$0xff] }
 0x5a9   : > { %v1767_v3 = vsel %vm870_vm7, %v3694_v32, %v3756_v31  ;;  %v1773_v34 = vsel %vm870_vm7, %v3756_v31, %v3694_v32  ;;  %v1768_v47 = vsel %vm870_vm7, %v3696_v29, %v3758_v33  ;;  %v1774_v21 = vsel %vm870_vm7, %v3758_v33, %v3696_v29  ;;  %v1419_v33 = vld [vmem:[#allocation3 + $0x20] sm:$0xff] }
 0x5aa   : > { %1401 = vrot.lane.b32.xlu0 %v3754_v30, %s2677_s30  ;;  %1534 = vrot.lane.b32.xlu1 %v3734_v24, %s4367_s27  ;;  %v1371_v32 = vmul.f32 %v1359_v13, %v3573_v53  ;;  %v1372_v31 = vmul.f32 %v1360_v23, %v3579_v55  ;;  %v1792_v7 = vmul.f32 %v1780_v42, %v1767_v3  ;;  %s2454_s30 = sshll.u32 %s2790_s5, 8  ;;  %s2685_s5 = smov [#allocation6]  }
 0x5ab   : > { %v1793_v22 = vmul.f32 %v1781_v28, %v1773_v34  ;;  %v1794_v0 = vmul.f32 %v1782_v17, %v1768_v47  ;;  %v1795_v29 = vmul.f32 %v1783_v40, %v1774_v21  ;;  %v1731_v55 = vadd.f32 %v1719_v26, %v1658_v58  ;;  %v1566_v28 = vld [vmem:[#allocation3 + $0xe8] sm:$0xff]  ;;  %v1638_v47 = vld [vmem:[#allocation3 + $0x140] sm:$0xff] }
 0x5ac   : > { %v3764_v52 = vpop.permute.xlu1 %1828  ;;  %v3766_v39 = vpop.permute.xlu0 %1830  ;;  %v1732_v60 = vadd.f32 %v1720_v37, %v1659_v12  ;;  %v1733_v44 = vadd.f32 %v1721_v10, %v1660_v38  ;;  %v1734_v19 = vadd.f32 %v1722_v11, %v1661_v18  ;;  %v1639_v21 = vld [vmem:[#allocation3 + $0x148] sm:$0xff]  ;;  %v1928_v12 = vld [vmem:[#allocation3 + $0x310] sm:$0xff]  ;;  %v1929_v38 = vld [vmem:[#allocation3 + $0x318] sm:$0xff] }
 0x5ad   : > { %v1841_v46 = vsel %vm908_vm8, %v3704_v49, %v3766_v39  ;;  %v1847_v48 = vsel %vm908_vm8, %v3766_v39, %v3704_v49  ;;  %v3910_v45 = vadd.f32 %v1792_v7, %v1731_v55  ;;  %v1565_v39 = vld [vmem:[#allocation3 + $0xe0] sm:$0xff] }
 0x5ae   : > { %1473 = vrot.lane.b32.xlu0 %v3754_v30, %s4366_s19  ;;  %1607 = vrot.lane.b32.xlu1 %v3734_v24, %s4368_s24  ;;  %v3912_v16 = vadd.f32 %v1793_v22, %v1732_v60  ;;  %v1806_v42 = vadd.f32 %v1794_v0, %v1733_v44  ;;  %v1807_v49 = vadd.f32 %v1795_v29, %v1734_v19 }
 0x5af   : > { %v1867_v10 = vmul.f32 %v1855_v62, %v1841_v46  ;;  %v1785_v46 = vld [vmem:[#allocation3 + $0x268] sm:$0xff] }
 0x5b0   : > { %v3790_v6 = vpop.permute.xlu1 %1901  ;;  %v3792_v8 = vpop.permute.xlu0 %1903 }
 0x5b1   : > { %v1914_v17 = vsel %vm946_vm9, %v3712_v50, %v3792_v8  ;;  %v1920_v40 = vsel %vm946_vm9, %v3792_v8, %v3712_v50  ;;  %v1840_v8 = vsel %vm908_vm8, %v3702_v14, %v3764_v52  ;;  %v1846_v50 = vsel %vm908_vm8, %v3764_v52, %v3702_v14  ;;  %v1854_v14 = vld [vmem:[#allocation3 + $0x2a8] sm:$0xff] }
 0x5b2   : > { %1546 = vrot.lane.b32.xlu0 %v3754_v30, %s4367_s27  ;;  %1753 = vrot.lane.b32.xlu1 %v3734_v24, %s4370_s28  ;;  %v1879_v60 = vadd.f32 %v1867_v10, %v1806_v42  ;;  %v1940_v19 = vmul.f32 %v1928_v12, %v1914_v17  ;;  %v1941_v62 = vmul.f32 %v1929_v38, %v1920_v40  ;;  %v1857_v40 = vld [vmem:[#allocation3 + $0x2c0] sm:$0xff]  ;;  %s4264_s27 = scalar_lea.hbm %s4321_s15, %s2454_s30 }
 0x5b3   : > { %v1919_v42 = vsel %vm946_vm9, %v3790_v6, %v3710_v15  ;;  %v1930_v38 = vld [vmem:[#allocation3 + $0x320] sm:$0xff] }
 0x5b4   : > { %v3814_v9 = vpop.permute.xlu1 %1383  ;;  %v3816_v4 = vpop.permute.xlu0 %1893 }
 0x5b6   : > { %1619 = vrot.lane.b32.xlu0 %v3754_v30, %s4368_s24  ;;  %1692 = vrot.lane.b32.xlu1 %v3754_v30, %s4369_s26 }
 0x5b8   : > { %v3838_v41 = vpop.permute.xlu1 %1455  ;;  %v1396_v57 = vpop.permute.xlu0 %1395 }
 0x5b9   : > { %v1405_v59 = vsel %vm681_vm2, %v3814_v9, %v1396_v57  ;;  %v1411_v53 = vsel %vm681_vm2, %v1396_v57, %v3814_v9 }
 0x5ba   : > { %1765 = vrot.lane.b32.xlu0 %v3754_v30, %s4370_s28  ;;  %1838 = vrot.lane.b32.xlu1 %v3754_v30, %s4371_s25  ;;  %v1431_v13 = vmul.f32 %v1419_v33, %v1411_v53  ;;  %v1432_v23 = vmul.f32 %v1420_v51, %v1405_v59  ;;  %v1711_v33 = vld [vmem:[#allocation3 + $0x200] sm:$0xff]  ;;  %s502_s25 = sand.u32 1, %s2662_s21   ;;  %s2608_s28 = sshll.u32 %s2685_s5, 4  ;;  %s2609_s28 = int_to_ptr.vmem [resolvable:$false] %s2608_s28 }
 0x5bb   : > { %s2292_s24 = scalar_lea.sflag [#allocation5], %s502_s25 }
 0x5bc   : > { %v1529_v20 = vpop.permute.xlu1 %1528  ;;  %v1468_v36 = vpop.permute.xlu0 %1467  ;;  %v1443_v18 = vadd.f32 %v1431_v13, %v1371_v32  ;;  %v1444_v7 = vadd.f32 %v1432_v23, %v1372_v31  ;;  %v1926_v23 = vld [vmem:[#allocation3 + $0x300] sm:$0xff] }
 0x5bd   : > { %v1477_v9 = vsel %vm718_vm3, %v3838_v41, %v1468_v36  ;;  %v1483_v57 = vsel %vm718_vm3, %v1468_v36, %v3838_v41  ;;  %v1868_v41 = vmul.f32 %v1856_v1, %v1847_v48  ;;  %v1784_v1 = vld [vmem:[#allocation3 + $0x260] sm:$0xff] }
 0x5be   : > { %1911 = vrot.lane.b32.xlu0 %v3754_v30, %s4372_s17  ;;  %1899 = vrot.lane.b32.xlu1 %v3734_v24, %s4372_s17  ;;  %v1504_v36 = vmul.f32 %v1492_v43, %v1483_v57  ;;  %v1505_v11 = vmul.f32 %v1493_v27, %v1477_v9  ;;  %v1853_v48 = vld [vmem:[#allocation3 + $0x2a0] sm:$0xff]  ;;  %s2383_s17 = sshll.u32 %s502_s25, 4 }
 0x5bf   : > { %v1880_v44 = vadd.f32 %v1868_v41, %v1807_v49  ;;  %v1865_v41 = vmul.f32 %v1853_v48, %v1840_v8  ;;  %s504_s22 = scalar_lea.vmem [#allocation6], %s2383_s17  ;;  %s2610_s17 = scalar_lea.vmem %s2609_s28, 512 }
 0x5c0   : > { %v1602_v61 = vpop.permute.xlu1 %1601  ;;  %v1541_v25 = vpop.permute.xlu0 %1540  ;;  %v1516_v51 = vadd.f32 %v1504_v36, %v1443_v18  ;;  %v1517_v59 = vadd.f32 %v1505_v11, %v1444_v7  ;;  %v1866_v36 = vmul.f32 %v1854_v14, %v1846_v50  ;;  %v1952_v11 = vadd.f32 %v1940_v19, %v1879_v60  ;;  %v1931_v18 = vld [vmem:[#allocation3 + $0x328] sm:$0xff]  ;;  %s2306_s16 = sshll.u32 %s504_s22, 4  ;;  %s4266_s16 = int_to_ptr.vmem [resolvable:$true] %s2306_s16 }
 0x5c1   : > { %v1550_v3 = vsel %vm756_vm4, %v1529_v20, %v1541_v25  ;;  %v1556_v34 = vsel %vm756_vm4, %v1541_v25, %v1529_v20  ;;  %v1953_v17 = vadd.f32 %v1941_v62, %v1880_v44  ;;  %s2604_s26 = scalar_lea.vmem %s4266_s16, 256  ;;  %p2611_p2 = scmp.lt.s32.totalorder %s4266_s16, %s2609_s28 }
 0x5c2   : > { %v1577_v22 = vmul.f32 %v1565_v39, %v1556_v34  ;;  %v1578_v25 = vmul.f32 %v1566_v28, %v1550_v3  ;;  %p2605_p6 = scmp.ne.s32.totalorder %s4266_s16, %s2604_s26  ;;  %p2612_p3 = scmp.lt.s32.totalorder %s2610_s17, %s2604_s26 }
 0x5c4   : > { %v1675_v26 = vpop.permute.xlu1 %1674  ;;  %v1614_v37 = vpop.permute.xlu0 %1613  ;;  %v1589_v52 = vadd.f32 %v1577_v22, %v1516_v51  ;;  %v1590_v43 = vadd.f32 %v1578_v25, %v1517_v59  ;;  %v3970_v51 = vadd.f32 %v3620_v35, %v1953_v17  ;;  %v1495_v17 = vld [vmem:[#allocation3 + $0x98] sm:$0xff]  ;;  %p2606_p10 = pnand %p2605_p6, %p4387_p9  ;;  %p2613_p4 = por %p2612_p3, %p2611_p2 }
 0x5c5   : > { %v1623_v58 = vsel %vm794_vm5, %v1602_v61, %v1614_v37  ;;  %v1629_v20 = vsel %vm794_vm5, %v1614_v37, %v1602_v61  ;;  %v1712_v61 = vld [vmem:[#allocation3 + $0x208] sm:$0xff]  ;;  %v1913_v37 = vsel %vm946_vm9, %v3710_v15, %v3790_v6 }
 0x5c6   : > { %v1650_v53 = vmul.f32 %v1638_v47, %v1629_v20  ;;  %v1651_v55 = vmul.f32 %v1639_v21, %v1623_v58  ;;  %v1858_v47 = vld [vmem:[#allocation3 + $0x2c8] sm:$0xff]  ;;  %v1938_v21 = vmul.f32 %v1926_v23, %v1913_v37  ;;  %p2607_p12 = pneg %p2606_p10 }
 0x5c8   : > { %v1748_v0 = vpop.permute.xlu1 %1747  ;;  %v1687_v29 = vpop.permute.xlu0 %1686  ;;  %v1662_v28 = vadd.f32 %v1650_v53, %v1589_v52  ;;  %v1663_v3 = vadd.f32 %v1651_v55, %v1590_v43  ;;  %p2614_p7 = pnand %p2613_p4, %p2607_p12 }
 0x5c9   : > { %v1696_v32 = vsel %vm832_vm6, %v1675_v26, %v1687_v29  ;;  %v1702_v31 = vsel %vm832_vm6, %v1687_v29, %v1675_v26  ;;  %v1927_v26 = vld [vmem:[#allocation3 + $0x308] sm:$0xff] }
 0x5ca   : > { %v1723_v27 = vmul.f32 %v1711_v33, %v1696_v32  ;;  %v1724_v9 = vmul.f32 %v1712_v61, %v1702_v31  ;;  %v1939_v58 = vmul.f32 %v1927_v26, %v1919_v42  ;;  %v1877_v61 = vadd.f32 %v1865_v41, %v3910_v45  ;;  %v1361_v41 = vld [vmem:[#allocation3 + $0x1b0] sm:$0xff] }
 0x5cb   : > { %v1878_v32 = vadd.f32 %v1866_v36, %v3912_v16  ;;  %v3967_v31 = vadd.f32 %v3620_v35, %v1952_v11  ;;  %v2013_v16 = vmax.f32 %v3970_v51, 0.0  ;;  %v1362_v36 = vld [vmem:[#allocation3 + $0x1b8] sm:$0xff]  ;;  %v1494_v11 = vld [vmem:[#allocation3 + $0x90] sm:$0xff] }
 0x5cc   : > { %v1821_v57 = vpop.permute.xlu1 %1820  ;;  %v1760_v13 = vpop.permute.xlu0 %1759  ;;  %v1735_v20 = vadd.f32 %v1723_v27, %v1662_v28  ;;  %v1736_v6 = vadd.f32 %v1724_v9, %v1663_v3  ;;  %v1950_v19 = vadd.f32 %v1938_v21, %v1877_v61  ;;  %v1422_v28 = vld [vmem:[#allocation3 + $0x38] sm:$0xff] }
 0x5cd   : > { %v1769_v49 = vsel %vm870_vm7, %v1748_v0, %v1760_v13  ;;  %v1775_v39 = vsel %vm870_vm7, %v1760_v13, %v1748_v0  ;;  %v1951_v62 = vadd.f32 %v1939_v58, %v1878_v32  ;;  %v2012_v45 = vmax.f32 %v3967_v31, 0.0 }
 0x5ce   : > { %v1796_v34 = vmul.f32 %v1784_v1, %v1769_v49  ;;  %v1797_v10 = vmul.f32 %v1785_v46, %v1775_v39  ;;  %v3983_v43 = vadd.f32 %v3618_v56, %v1950_v19  ;;  %v1421_v39 = vld [vmem:[#allocation3 + $0x30] sm:$0xff] }
 0x5cf   : > { %v3986_v27 = vadd.f32 %v3618_v56, %v1951_v62  ;;  %v2025_v9 = vadd.f32 %v2013_v16, %v2012_v45 }
 0x5d0   : > { %v1906_v15 = vpop.permute.xlu1 %1905  ;;  %v1833_v12 = vpop.permute.xlu0 %1832  ;;  %v1808_v29 = vadd.f32 %v1796_v34, %v1735_v20  ;;  %v1809_v8 = vadd.f32 %v1797_v10, %v1736_v6 }
 0x5d1   : > { %v1915_v7 = vsel %vm946_vm9, %v3816_v4, %v1906_v15  ;;  %v1921_v22 = vsel %vm946_vm9, %v1906_v15, %v3816_v4  ;;  %v1842_v25 = vsel %vm908_vm8, %v1821_v57, %v1833_v12  ;;  %v1848_v0 = vsel %vm908_vm8, %v1833_v12, %v1821_v57  ;;  %v1567_v15 = vld [vmem:[#allocation3 + $0xf0] sm:$0xff]  ;;  %v1568_v12 = vld [vmem:[#allocation3 + $0xf8] sm:$0xff] }
 0x5d2   : > { %v1869_v50 = vmul.f32 %v1857_v40, %v1842_v25  ;;  %v1870_v33 = vmul.f32 %v1858_v47, %v1848_v0  ;;  %v1942_v4 = vmul.f32 %v1930_v38, %v1915_v7  ;;  %v1943_v59 = vmul.f32 %v1931_v18, %v1921_v22 }
 0x5d3   : > { %v2011_v37 = vmax.f32 %v3986_v27, 0.0  ;;  %v1373_v7 = vmul.f32 %v1361_v41, %v3611_v63  ;;  %v1374_v22 = vmul.f32 %v1362_v36, %v3622_v2  ;;  %v1714_v63 = vld [vmem:[#allocation3 + $0x218] sm:$0xff] }
 0x5d4   : > { %v1881_v53 = vadd.f32 %v1869_v50, %v1808_v29  ;;  %v1882_v55 = vadd.f32 %v1870_v33, %v1809_v8  ;;  %v1386_v60 = vpop.permute.xlu1 %1385  ;;  %v3972_v44 = vpop.permute.xlu0 %1822  ;;  %v1640_v29 = vld [vmem:[#allocation3 + $0x150] sm:$0xff]  ;;  %v1641_v8 = vld [vmem:[#allocation3 + $0x158] sm:$0xff] }
 0x5d6   : > { %v1954_v1 = vadd.f32 %v1942_v4, %v1881_v53  ;;  %v1955_v46 = vadd.f32 %v1943_v59, %v1882_v55 }
 0x5d8   : > { %v1458_v48 = vpop.permute.xlu1 %1457  ;;  %v1398_v14 = vpop.permute.xlu0 %1397  ;;  %v3977_v35 = vadd.f32 %v3628_v5, %v1954_v1  ;;  %v3980_v52 = vadd.f32 %v3628_v5, %v1955_v46  ;;  %v2010_v5 = vmax.f32 %v3983_v43, 0.0 }
 0x5d9   : > { %v1406_v3 = vsel %vm681_vm2, %v1386_v60, %v1398_v14  ;;  %v1412_v34 = vsel %vm681_vm2, %v1398_v14, %v1386_v60  ;;  %v1713_v60 = vld [vmem:[#allocation3 + $0x210] sm:$0xff] }
 0x5da   : > { %v2014_v57 = vmax.f32 %v3977_v35, 0.0  ;;  %v2015_v13 = vmax.f32 %v3980_v52, 0.0  ;;  %v2022_v10 = vadd.f32 %v2011_v37, %v2010_v5  ;;  %v1433_v21 = vmul.f32 %v1421_v39, %v1412_v34  ;;  %v1786_v14 = vld [vmem:[#allocation3 + $0x270] sm:$0xff] }
 0x5db   : > { %v1434_v58 = vmul.f32 %v1422_v28, %v1406_v3 }
 0x5dc   : > { %v1531_v23 = vpop.permute.xlu1 %1530  ;;  %v1470_v26 = vpop.permute.xlu0 %1469  ;;  %v2028_v56 = vadd.f32 %v2015_v13, %v2014_v57  ;;  %v1445_v61 = vadd.f32 %v1433_v21, %v1373_v7 }
 0x5dd   : > { %2026 = vadd.xlane.f32.xlu0 %v2025_v9  ;;  %v1478_v40 = vsel %vm718_vm3, %v1458_v48, %v1470_v26  ;;  %v1484_v47 = vsel %vm718_vm3, %v1470_v26, %v1458_v48  ;;  %v1446_v32 = vadd.f32 %v1434_v58, %v1374_v22  ;;  %v1787_v9 = vld [vmem:[#allocation3 + $0x278] sm:$0xff] }
 0x5de   : > { %v1506_v25 = vmul.f32 %v1494_v11, %v1484_v47  ;;  %v1507_v0 = vmul.f32 %v1495_v17, %v1478_v40  ;;  %v1859_v11 = vld [vmem:[#allocation3 + $0x2d0] sm:$0xff]  ;;  %v1860_v17 = vld [vmem:[#allocation3 + $0x2d8] sm:$0xff] }
 0x5e0   : > { %v1604_v42 = vpop.permute.xlu1 %1603  ;;  %v1543_v49 = vpop.permute.xlu0 %1542  ;;  %v1518_v62 = vadd.f32 %v1506_v25, %v1445_v61  ;;  %v1519_v1 = vadd.f32 %v1507_v0, %v1446_v32 }
 0x5e1   : > { %2029 = vadd.xlane.f32.xlu0 %v2028_v56  ;;  %v1551_v38 = vsel %vm756_vm4, %v1531_v23, %v1543_v49  ;;  %v1557_v18 = vsel %vm756_vm4, %v1543_v49, %v1531_v23 }
 0x5e2   : > { %2023 = vadd.xlane.f32.xlu1 %v2022_v10  ;;  %v1579_v4 = vmul.f32 %v1567_v15, %v1557_v18  ;;  %v1580_v59 = vmul.f32 %v1568_v12, %v1551_v38  ;;  %v1932_v15 = vld [vmem:[#allocation3 + $0x330] sm:$0xff]  ;;  %v1933_v12 = vld [vmem:[#allocation3 + $0x338] sm:$0xff] }
 0x5e4   : > { %v1677_v20 = vpop.permute.xlu1 %1676  ;;  %v1616_v6 = vpop.permute.xlu0 %1615  ;;  %v1591_v23 = vadd.f32 %v1579_v4, %v1518_v62  ;;  %v1592_v26 = vadd.f32 %v1580_v59, %v1519_v1 }
 0x5e5   : > { %v1624_v50 = vsel %vm794_vm5, %v1604_v42, %v1616_v6  ;;  %v1630_v33 = vsel %vm794_vm5, %v1616_v6, %v1604_v42 }
 0x5e6   : > { %v1652_v46 = vmul.f32 %v1640_v29, %v1630_v33  ;;  %v1653_v48 = vmul.f32 %v1641_v8, %v1624_v50 }
 0x5e8   : > { %v1750_v53 = vpop.permute.xlu1 %1749  ;;  %v1689_v55 = vpop.permute.xlu0 %1688  ;;  %v1664_v34 = vadd.f32 %v1652_v46, %v1591_v23  ;;  %v1665_v10 = vadd.f32 %v1653_v48, %v1592_v26  ;;  %v1423_v48 = vld [vmem:[#allocation3 + $0x40] sm:$0xff] }
 0x5e9   : > { %v1697_v2 = vsel %vm832_vm6, %v1677_v20, %v1689_v55  ;;  %v1703_v19 = vsel %vm832_vm6, %v1689_v55, %v1677_v20  ;;  %v4378_v55 = vld [vmem:[#allocation16_spill] sm:$0xff] }
 0x5ea   : > { %v1725_v56 = vmul.f32 %v1713_v60, %v1697_v2  ;;  %v1726_v42 = vmul.f32 %v1714_v63, %v1703_v19 }
 0x5ec   : > { %v1896_v49 = vpop.permute.xlu1 %1895  ;;  %v1762_v39 = vpop.permute.xlu0 %1761  ;;  %v1737_v40 = vadd.f32 %v1725_v56, %v1664_v34  ;;  %v1738_v47 = vadd.f32 %v1726_v42, %v1665_v10  ;;  %v1363_v42 = vld [vmem:[#allocation3 + $0x1c0] sm:$0xff] }
 0x5ed   : > { %v1770_v28 = vsel %vm870_vm7, %v1750_v53, %v1762_v39  ;;  %v1776_v3 = vsel %vm870_vm7, %v1762_v39, %v1750_v53  ;;  %v1496_v39 = vld [vmem:[#allocation3 + $0xa0] sm:$0xff] }
 0x5ee   : > { %v1798_v41 = vmul.f32 %v1786_v14, %v1770_v28  ;;  %v1799_v36 = vmul.f32 %v1787_v9, %v1776_v3  ;;  %v1424_v14 = vld [vmem:[#allocation3 + $0x48] sm:$0xff] }
 0x5ef   : > { %v1497_v28 = vld [vmem:[#allocation3 + $0xa8] sm:$0xff] }
 0x5f0   : > { %v1835_v21 = vpop.permute.xlu1 %1834  ;;  %v1908_v58 = vpop.permute.xlu0 %1907  ;;  %v1810_v7 = vadd.f32 %v1798_v41, %v1737_v40  ;;  %v1811_v22 = vadd.f32 %v1799_v36, %v1738_v47  ;;  %v4379_v36 = vld [vmem:[#allocation19_spill] sm:$0xff] }
 0x5f1   : > { %v1843_v20 = vsel %vm908_vm8, %v3972_v44, %v1835_v21  ;;  %v1849_v6 = vsel %vm908_vm8, %v1835_v21, %v3972_v44  ;;  %v1916_v38 = vsel %vm946_vm9, %v1896_v49, %v1908_v58  ;;  %v1922_v18 = vsel %vm946_vm9, %v1908_v58, %v1896_v49  ;;  %v1364_v49 = vld [vmem:[#allocation3 + $0x1c8] sm:$0xff]  ;;  %v1569_v21 = vld [vmem:[#allocation3 + $0x100] sm:$0xff] }
 0x5f2   : > { %v1871_v25 = vmul.f32 %v1859_v11, %v1843_v20  ;;  %v1872_v0 = vmul.f32 %v1860_v17, %v1849_v6  ;;  %v1944_v50 = vmul.f32 %v1932_v15, %v1916_v38  ;;  %v1945_v33 = vmul.f32 %v1933_v12, %v1922_v18  ;;  %v4380_v17 = vld [vmem:[#allocation20_spill] sm:$0xff]  ;;  %v1570_v58 = vld [vmem:[#allocation3 + $0x108] sm:$0xff] }
 0x5f3   : > { %v1375_v11 = vmul.f32 %v1363_v42, %v4379_v36  ;;  %v1376_v40 = vmul.f32 %v1364_v49, %v4380_v17  ;;  %v1789_v42 = vld [vmem:[#allocation3 + $0x288] sm:$0xff] }
 0x5f4   : > { %v1883_v29 = vadd.f32 %v1871_v25, %v1810_v7  ;;  %v1884_v8 = vadd.f32 %v1872_v0, %v1811_v22  ;;  %v1388_v61 = vpop.permute.xlu1 %1387  ;;  %v4040_v32 = vpop.permute.xlu0 %1751  ;;  %v1642_v0 = vld [vmem:[#allocation3 + $0x160] sm:$0xff] }
 0x5f6   : > { %v1956_v44 = vadd.f32 %v1944_v50, %v1883_v29  ;;  %v1957_v4 = vadd.f32 %v1945_v33, %v1884_v8  ;;  %v1643_v29 = vld [vmem:[#allocation3 + $0x168] sm:$0xff] }
 0x5f8   : > { %v1460_v59 = vpop.permute.xlu1 %1459  ;;  %v4042_v53 = vpop.permute.xlu0 %1897  ;;  %v4045_v60 = vadd.f32 %v4378_v55, %v1956_v44  ;;  %v4048_v63 = vadd.f32 %v4378_v55, %v1957_v4 }
 0x5fa   : > { %v2016_v2 = vmax.f32 %v4045_v60, 0.0  ;;  %v2017_v19 = vmax.f32 %v4048_v63, 0.0  ;;  %v2203_v63 = vld [vmem:[%s4320_s14] sm:$0xff] }
 0x5fc   : > { %v1533_v62 = vpop.permute.xlu1 %1532  ;;  %v1400_v1 = vpop.permute.xlu0 %1399  ;;  %v2031_v46 = vadd.f32 %v2017_v19, %v2016_v2 }
 0x5fd   : > { %v1407_v9 = vsel %vm681_vm2, %v1388_v61, %v1400_v1  ;;  %v1413_v23 = vsel %vm681_vm2, %v1400_v1, %v1388_v61 }
 0x5fe   : > { %2032 = vadd.xlane.f32.xlu1 %v2031_v46  ;;  %v1435_v10 = vmul.f32 %v1423_v48, %v1413_v23  ;;  %v1436_v41 = vmul.f32 %v1424_v14, %v1407_v9  ;;  %v1715_v46 = vld [vmem:[#allocation3 + $0x220] sm:$0xff]  ;;  %v1716_v48 = vld [vmem:[#allocation3 + $0x228] sm:$0xff] }
 0x600   : > { %v1606_v26 = vpop.permute.xlu1 %1605  ;;  %v1472_v56 = vpop.permute.xlu0 %1471  ;;  %v1447_v18 = vadd.f32 %v1435_v10, %v1375_v11  ;;  %v1448_v7 = vadd.f32 %v1436_v41, %v1376_v40  ;;  %v1861_v40 = vld [vmem:[#allocation3 + $0x2e0] sm:$0xff] }
 0x601   : > { %v1479_v3 = vsel %vm718_vm3, %v1460_v59, %v1472_v56  ;;  %v1485_v34 = vsel %vm718_vm3, %v1472_v56, %v1460_v59  ;;  %v1788_v56 = vld [vmem:[#allocation3 + $0x280] sm:$0xff] }
 0x602   : > { %v1508_v6 = vmul.f32 %v1496_v39, %v1485_v34  ;;  %v1509_v15 = vmul.f32 %v1497_v28, %v1479_v3 }
 0x604   : > { %v1679_v47 = vpop.permute.xlu1 %1678  ;;  %v1545_v20 = vpop.permute.xlu0 %1544  ;;  %v1520_v50 = vadd.f32 %v1508_v6, %v1447_v18  ;;  %v1521_v33 = vadd.f32 %v1509_v15, %v1448_v7  ;;  %v1934_v15 = vld [vmem:[#allocation3 + $0x340] sm:$0xff] }
 0x605   : > { %v1552_v12 = vsel %vm756_vm4, %v1533_v62, %v1545_v20  ;;  %v1558_v38 = vsel %vm756_vm4, %v1545_v20, %v1533_v62 }
 0x606   : > { %v1581_v22 = vmul.f32 %v1569_v21, %v1558_v38  ;;  %v1582_v25 = vmul.f32 %v1570_v58, %v1552_v12  ;;  %v1862_v21 = vld [vmem:[#allocation3 + $0x2e8] sm:$0xff] }
 0x607   : > { %v1935_v12 = vld [vmem:[#allocation3 + $0x348] sm:$0xff] }
 0x608   : > { %v1618_v8 = vpop.permute.xlu0 %1617  ;;  %v1825_v61 = vpop.permute.xlu1 %1824  ;;  %v1593_v1 = vadd.f32 %v1581_v22, %v1520_v50  ;;  %v1594_v62 = vadd.f32 %v1582_v25, %v1521_v33 }
 0x609   : > { %v1625_v44 = vsel %vm794_vm5, %v1606_v26, %v1618_v8  ;;  %v1631_v4 = vsel %vm794_vm5, %v1618_v8, %v1606_v26 }
 0x60a   : > { %v1654_v59 = vmul.f32 %v1642_v0, %v1631_v4  ;;  %v1655_v55 = vmul.f32 %v1643_v29, %v1625_v44 }
 0x60c   : > { %v1691_v14 = vpop.permute.xlu0 %1690  ;;  %v1666_v9 = vadd.f32 %v1654_v59, %v1593_v1  ;;  %v1667_v23 = vadd.f32 %v1655_v55, %v1594_v62  ;;  %v1764_v49 = vpop.permute.xlu1 %1763  ;;  %v4381_v1 = vld [vmem:[#allocation17_spill] sm:$0xff] }
 0x60d   : > { %v1698_v39 = vsel %vm832_vm6, %v1679_v47, %v1691_v14  ;;  %v1704_v28 = vsel %vm832_vm6, %v1691_v14, %v1679_v47  ;;  %v1771_v26 = vsel %vm870_vm7, %v4040_v32, %v1764_v49  ;;  %v1777_v3 = vsel %vm870_vm7, %v1764_v49, %v4040_v32 }
 0x60e   : > { %v1727_v34 = vmul.f32 %v1715_v46, %v1698_v39  ;;  %v1728_v10 = vmul.f32 %v1716_v48, %v1704_v28  ;;  %v1800_v41 = vmul.f32 %v1788_v56, %v1771_v26  ;;  %v1801_v36 = vmul.f32 %v1789_v42, %v1777_v3  ;;  %v1425_v56 = vld [vmem:[#allocation3 + $0x50] sm:$0xff]  ;;  %v1426_v42 = vld [vmem:[#allocation3 + $0x58] sm:$0xff] }
 0x60f   : > { %v1365_v28 = vld [vmem:[#allocation3 + $0x1d0] sm:$0xff]  ;;  %v1366_v26 = vld [vmem:[#allocation3 + $0x1d8] sm:$0xff] }
 0x610   : > { %v1739_v11 = vadd.f32 %v1727_v34, %v1666_v9  ;;  %v1740_v17 = vadd.f32 %v1728_v10, %v1667_v23  ;;  %v1837_v58 = vpop.permute.xlu0 %1836  ;;  %v1910_v20 = vpop.permute.xlu1 %1909  ;;  %v1498_v3 = vld [vmem:[#allocation3 + $0xb0] sm:$0xff]  ;;  %v1499_v34 = vld [vmem:[#allocation3 + $0xb8] sm:$0xff] }
 0x611   : > { %v1844_v47 = vsel %vm908_vm8, %v1825_v61, %v1837_v58  ;;  %v1850_v6 = vsel %vm908_vm8, %v1837_v58, %v1825_v61  ;;  %v1917_v32 = vsel %vm946_vm9, %v4042_v53, %v1910_v20  ;;  %v1923_v38 = vsel %vm946_vm9, %v1910_v20, %v4042_v53 }
 0x612   : > { %v1812_v18 = vadd.f32 %v1800_v41, %v1739_v11  ;;  %v1813_v7 = vadd.f32 %v1801_v36, %v1740_v17  ;;  %v1873_v22 = vmul.f32 %v1861_v40, %v1844_v47  ;;  %v1874_v25 = vmul.f32 %v1862_v21, %v1850_v6  ;;  %v1571_v6 = vld [vmem:[#allocation3 + $0x110] sm:$0xff] }
 0x613   : > { %v1946_v29 = vmul.f32 %v1934_v15, %v1917_v32  ;;  %v1947_v8 = vmul.f32 %v1935_v12, %v1923_v38  ;;  %v1377_v21 = vmul.f32 %v1365_v28, %v3734_v24  ;;  %v1378_v58 = vmul.f32 %v1366_v26, %v3754_v30  ;;  %v1572_v15 = vld [vmem:[#allocation3 + $0x118] sm:$0xff] }
 0x614   : > { %v1681_v0 = vpop.permute.xlu0 %1680  ;;  %v1885_v50 = vadd.f32 %v1873_v22, %v1812_v18  ;;  %v1886_v33 = vadd.f32 %v1874_v25, %v1813_v7  ;;  %v1390_v61 = vpop.permute.xlu1 %1389  ;;  %v1645_v30 = vld [vmem:[#allocation3 + $0x178] sm:$0xff] }
 0x616   : > { %v1958_v44 = vadd.f32 %v1946_v29, %v1885_v50  ;;  %v1959_v4 = vadd.f32 %v1947_v8, %v1886_v33  ;;  %v1644_v50 = vld [vmem:[#allocation3 + $0x170] sm:$0xff] }
 0x618   : > { %v4094_v59 = vpop.permute.xlu0 %1826  ;;  %v1462_v55 = vpop.permute.xlu1 %1461  ;;  %v4097_v62 = vadd.f32 %v4381_v1, %v1958_v44  ;;  %v4100_v53 = vadd.f32 %v4381_v1, %v1959_v4  ;;  %v1717_v4 = vld [vmem:[#allocation3 + $0x230] sm:$0xff] }
 0x61a   : > { %v2018_v46 = vmax.f32 %v4097_v62, 0.0  ;;  %v2019_v48 = vmax.f32 %v4100_v53, 0.0 }
 0x61c   : > { %v1402_v14 = vpop.permute.xlu0 %1401  ;;  %v1535_v9 = vpop.permute.xlu1 %1534  ;;  %v2034_v23 = vadd.f32 %v2019_v48, %v2018_v46 }
 0x61d   : > { %v1408_v49 = vsel %vm681_vm2, %v1390_v61, %v1402_v14  ;;  %v1414_v39 = vsel %vm681_vm2, %v1402_v14, %v1390_v61 }
 0x61e   : > { %2035 = vadd.xlane.f32.xlu0 %v2034_v23  ;;  %v1437_v41 = vmul.f32 %v1425_v56, %v1414_v39  ;;  %v1438_v36 = vmul.f32 %v1426_v42, %v1408_v49 }
 0x620   : > { %v1474_v10 = vpop.permute.xlu0 %1473  ;;  %v1608_v11 = vpop.permute.xlu1 %1607  ;;  %v1449_v32 = vadd.f32 %v1437_v41, %v1377_v21  ;;  %v1450_v38 = vadd.f32 %v1438_v36, %v1378_v58  ;;  %v1864_v21 = vld [vmem:[#allocation3 + $0x2f8] sm:$0xff] }
 0x621   : > { %v1480_v17 = vsel %vm718_vm3, %v1462_v55, %v1474_v10  ;;  %v1486_v40 = vsel %vm718_vm3, %v1474_v10, %v1462_v55  ;;  %v1718_v55 = vld [vmem:[#allocation3 + $0x238] sm:$0xff] }
 0x622   : > { %v1510_v20 = vmul.f32 %v1498_v3, %v1486_v40  ;;  %v1511_v47 = vmul.f32 %v1499_v34, %v1480_v17  ;;  %v1790_v34 = vld [vmem:[#allocation3 + $0x290] sm:$0xff]  ;;  %v1791_v10 = vld [vmem:[#allocation3 + $0x298] sm:$0xff] }
 0x623   : > { %v1863_v40 = vld [vmem:[#allocation3 + $0x2f0] sm:$0xff] }
 0x624   : > { %v1547_v12 = vpop.permute.xlu0 %1546  ;;  %v1754_v18 = vpop.permute.xlu1 %1753  ;;  %v1522_v8 = vadd.f32 %v1510_v20, %v1449_v32  ;;  %v1523_v24 = vadd.f32 %v1511_v47, %v1450_v38  ;;  %v1937_v32 = vld [vmem:[#allocation3 + $0x358] sm:$0xff] }
 0x625   : > { %v1553_v7 = vsel %vm756_vm4, %v1535_v9, %v1547_v12  ;;  %v1559_v22 = vsel %vm756_vm4, %v1547_v12, %v1535_v9  ;;  %v1936_v12 = vld [vmem:[#allocation3 + $0x350] sm:$0xff] }
 0x626   : > { %v1583_v25 = vmul.f32 %v1571_v6, %v1559_v22  ;;  %v1584_v29 = vmul.f32 %v1572_v15, %v1553_v7 }
 0x628   : > { %v1620_v33 = vpop.permute.xlu0 %1619  ;;  %v1595_v61 = vadd.f32 %v1583_v25, %v1522_v8  ;;  %v1596_v44 = vadd.f32 %v1584_v29, %v1523_v24  ;;  %v1693_v1 = vpop.permute.xlu1 %1692 }
 0x629   : > { %v1626_v14 = vsel %vm794_vm5, %v1608_v11, %v1620_v33  ;;  %v1632_v23 = vsel %vm794_vm5, %v1620_v33, %v1608_v11  ;;  %v1699_v9 = vsel %vm832_vm6, %v1681_v0, %v1693_v1  ;;  %v1705_v56 = vsel %vm832_vm6, %v1693_v1, %v1681_v0 }
 0x62a   : > { %v1656_v42 = vmul.f32 %v1644_v50, %v1632_v23  ;;  %v1657_v49 = vmul.f32 %v1645_v30, %v1626_v14  ;;  %v1729_v39 = vmul.f32 %v1717_v4, %v1699_v9  ;;  %v1730_v28 = vmul.f32 %v1718_v55, %v1705_v56  ;;  %v4382_v4 = vld [vmem:[#allocation18_spill] sm:$0xff] }
 0x62c   : > { %v1668_v26 = vadd.f32 %v1656_v42, %v1595_v61  ;;  %v1669_v3 = vadd.f32 %v1657_v49, %v1596_v44  ;;  %v1766_v41 = vpop.permute.xlu0 %1765  ;;  %v1839_v36 = vpop.permute.xlu1 %1838 }
 0x62d   : > { %v1772_v17 = vsel %vm870_vm7, %v1754_v18, %v1766_v41  ;;  %v1778_v11 = vsel %vm870_vm7, %v1766_v41, %v1754_v18  ;;  %v1845_v0 = vsel %vm908_vm8, %v4094_v59, %v1839_v36  ;;  %v1851_v58 = vsel %vm908_vm8, %v1839_v36, %v4094_v59 }
 0x62e   : > { %v1741_v20 = vadd.f32 %v1729_v39, %v1668_v26  ;;  %v1742_v47 = vadd.f32 %v1730_v28, %v1669_v3  ;;  %v1802_v6 = vmul.f32 %v1790_v34, %v1772_v17  ;;  %v1803_v15 = vmul.f32 %v1791_v10, %v1778_v11  ;;  %v2046_v39 = vld [vmem:[%s4317_s11] sm:$0xff]  ;;  %v2047_v26 = vld [vmem:[%s4317_s11 + $0x8] sm:$0xff]  ;;  %v2048_v11 = vld [vmem:[%s4317_s11 + $0x10] sm:$0xff] }
 0x62f   : > { %v1875_v7 = vmul.f32 %v1863_v40, %v1845_v0  ;;  %v1876_v22 = vmul.f32 %v1864_v21, %v1851_v58  ;;  %v2049_v40 = vld [vmem:[%s4317_s11 + $0x18] sm:$0xff]  ;;  %v2050_v58 = vld [vmem:[%s4317_s11 + $0x20] sm:$0xff] }
 0x630   : > { %v1912_v38 = vpop.permute.xlu0 %1911  ;;  %v1814_v18 = vadd.f32 %v1802_v6, %v1741_v20  ;;  %v1815_v25 = vadd.f32 %v1803_v15, %v1742_v47  ;;  %v1900_v29 = vpop.permute.xlu1 %1899 }
 0x631   : > { %v1918_v8 = vsel %vm946_vm9, %v1900_v29, %v1912_v38  ;;  %v1924_v24 = vsel %vm946_vm9, %v1912_v38, %v1900_v29 }
 0x632   : > { %v1887_v50 = vadd.f32 %v1875_v7, %v1814_v18  ;;  %v1888_v59 = vadd.f32 %v1876_v22, %v1815_v25  ;;  %v1948_v30 = vmul.f32 %v1936_v12, %v1918_v8  ;;  %v1949_v33 = vmul.f32 %v1937_v32, %v1924_v24  ;;  %v2051_v22 = vld [vmem:[%s4317_s11 + $0x28] sm:$0xff] }
 0x634   : > { %v1960_v61 = vadd.f32 %v1948_v30, %v1887_v50  ;;  %v1961_v44 = vadd.f32 %v1949_v33, %v1888_v59 }
 0x636   : > { %v4145_v55 = vadd.f32 %v4382_v4, %v1960_v61  ;;  %v4148_v1 = vadd.f32 %v4382_v4, %v1961_v44 }
 0x638   : > { %v2020_v14 = vmax.f32 %v4145_v55, 0.0  ;;  %v2021_v23 = vmax.f32 %v4148_v1, 0.0 }
 0x63a   : > { %v2037_v54 = vadd.f32 %v2021_v23, %v2020_v14 }
 0x63c   : > { %2038 = vadd.xlane.f32.xlu1 %v2037_v54 }
 0x66a   : > { %v2027_v9 = vpop.xlane.xlu0 %2026 }
 0x66b   : > { %v2041_v28 = vmul.f32 0.00390625, %v2027_v9  ;;  %v2076_v9 = vld [vmem:[%s4318_s12] sm:$0x1] }
 0x66d   : > { %v2053_v41 = vmul.f32 %v2047_v26, %v2041_v28  ;;  %v2079_v28 = vld [vmem:[%s4319_s13] sm:$0xff] }
 0x66e   : > { %v2030_v49 = vpop.xlane.xlu0 %2029  ;;  %v4383_v26 = vld [vmem:[#allocation13_spill] sm:$0xff] }
 0x66f   : > { %v2024_v56 = vpop.xlane.xlu1 %2023  ;;  %v2042_v36 = vmul.f32 0.00390625, %v2030_v49  ;;  %v2060_v20 = vsel %vm2058_vm13, %v2053_v41, 0.0  ;;  %v2081_v41 = vld [vmem:[%s4319_s13 + $0x10] sm:$0xff] }
 0x670   : > { %v2040_v42 = vmul.f32 0.00390625, %v2024_v56 }
 0x671   : > { %v2054_v47 = vmul.f32 %v2048_v11, %v2042_v36 }
 0x672   : > { %v2052_v34 = vmul.f32 %v2046_v39, %v2040_v42  ;;  %v2080_v39 = vld [vmem:[%s4319_s13 + $0x8] sm:$0xff] }
 0x673   : > { %v2062_v32 = vsel %vm2058_vm13, %v2054_v47, 0.0 }
 0x674   : > { %v2059_v21 = vsel %vm2058_vm13, %v2052_v34, 0.0 }
 0x675   : > { %v2061_v15 = vadd.f32 %v2060_v20, %v2059_v21  ;;  %v2083_v20 = vld [vmem:[%s4319_s13 + $0x20] sm:$0xff] }
 0x677   : > { %v2063_v7 = vadd.f32 %v2062_v32, %v2061_v15 }
 0x68b   : > { %v2033_v3 = vpop.xlane.xlu1 %2032 }
 0x68c   : > { %v2043_v17 = vmul.f32 0.00390625, %v2033_v3  ;;  %v4384_v3 = vsub.s32 0, %v4383_v26 }
 0x68e   : > { %v2055_v6 = vmul.f32 %v2049_v40, %v2043_v17 }
 0x690   : > { %v2064_v38 = vsel %vm2058_vm13, %v2055_v6, 0.0 }
 0x691   : > { %v2065_v8 = vadd.f32 %v2064_v38, %v2063_v7  ;;  %v2114_v7 = vld [vmem:[%s4315_s9 + $0x68] sm:$0xff] }
 0x6ab   : > { %v2036_v10 = vpop.xlane.xlu0 %2035 }
 0x6ac   : > { %v2044_v0 = vmul.f32 0.00390625, %v2036_v10  ;;  %v2082_v10 = vld [vmem:[%s4319_s13 + $0x18] sm:$0xff] }
 0x6ae   : > { %v2056_v12 = vmul.f32 %v2050_v58, %v2044_v0  ;;  %v2084_v58 = vld [vmem:[%s4319_s13 + $0x28] sm:$0xff] }
 0x6b0   : > { %v2066_v25 = vsel %vm2058_vm13, %v2056_v12, 0.0 }
 0x6b1   : > { %v2067_v50 = vadd.f32 %v2066_v25, %v2065_v8 }
 0x6c9   : > { %v2039_v18 = vpop.xlane.xlu1 %2038 }
 0x6ca   : > { %v2045_v29 = vmul.f32 0.00390625, %v2039_v18 }
 0x6cc   : > { %v2057_v24 = vmul.f32 %v2051_v22, %v2045_v29  ;;  %v2113_v22 = vld [vmem:[%s4315_s9 + $0x60] sm:$0xff] }
 0x6ce   : > { %v2068_v59 = vsel %vm2058_vm13, %v2057_v24, 0.0  ;;  %v2116_v24 = vld [vmem:[%s4315_s9 + $0x78] sm:$0xff] }
 0x6cf   : > { %v2069_v30 = vadd.f32 %v2068_v59, %v2067_v50  ;;  %v2115_v50 = vld [vmem:[%s4315_s9 + $0x70] sm:$0xff] }
 0x6d1   : > { %v2070_v33 = vrot.slane %v2069_v30, 4 }
 0x6d3   : > { %v2071_v61 = vadd.f32 %v2070_v33, %v2069_v30 }
 0x6d5   : > { %v2072_v44 = vrot.slane %v2071_v61, 2 }
 0x6d7   : > { %v2073_v4 = vadd.f32 %v2072_v44, %v2071_v61 }
 0x6d9   : > { %v2074_v54 = vrot.slane %v2073_v4, 1 }
 0x6db   : > { %v2075_v56 = vadd.f32 %v2074_v54, %v2073_v4 }
 0x6dd   : > { %v2077_v42 = vadd.f32 %v2076_v9, %v2075_v56  ;;  %v2118_v56 = vld [vmem:[%s4315_s9 + $0x88] sm:$0xff] }
 0x6df   : > { %v2078_v49 = vmax.f32 %v2077_v42, 0.0  ;;  %v2117_v42 = vld [vmem:[%s4315_s9 + $0x80] sm:$0xff] }
 0x6e1   : > { %v2088_v34 = vrot.slane %v2078_v49, %v4384_v3 }
 0x6e3   : > { %v2090_v36 = vmul.f32 %v2088_v34, %v2080_v39  ;;  %v2089_v17 = vmul.f32 %v2088_v34, %v2079_v28  ;;  %v2092_v21 = vmul.f32 %v2088_v34, %v2082_v10  ;;  %v2091_v0 = vmul.f32 %v2088_v34, %v2081_v41 }
 0x6e4   : > { %v2094_v15 = vmul.f32 %v2088_v34, %v2084_v58  ;;  %v2093_v12 = vmul.f32 %v2088_v34, %v2083_v20 }
 0x6e5   : > { %v2098_v11 = vsel %vm2058_vm13, %v2090_v36, 0.0  ;;  %v2095_v40 = vsel %vm2058_vm13, %v2089_v17, 0.0  ;;  %v2104_v47 = vsel %vm2058_vm13, %v2092_v21, 0.0  ;;  %v2101_v6 = vsel %vm2058_vm13, %v2091_v0, 0.0 }
 0x6e6   : > { %2099 = vadd.xlane.f32.xlu1 %v2098_v11  ;;  %2096 = vadd.xlane.f32.xlu0 %v2095_v40  ;;  %v2110_v32 = vsel %vm2058_vm13, %v2094_v15, 0.0  ;;  %v2107_v38 = vsel %vm2058_vm13, %v2093_v12, 0.0 }
 0x6ea   : > { %2105 = vadd.xlane.f32.xlu1 %v2104_v47  ;;  %2102 = vadd.xlane.f32.xlu0 %v2101_v6 }
 0x6ee   : > { %2111 = vadd.xlane.f32.xlu1 %v2110_v32  ;;  %2108 = vadd.xlane.f32.xlu0 %v2107_v38 }
 0x773   : > { %v2100_v18 = vpop.xlane.xlu1 %2099  ;;  %v2097_v25 = vpop.xlane.xlu0 %2096 }
 0x774   : > { %v2120_v29 = vadd.f32 %v2114_v7, %v2100_v18  ;;  %v2119_v8 = vadd.f32 %v2113_v22, %v2097_v25 }
 0x776   : > { %v2126_v59 = vsub.f32 0.0, %v2120_v29  ;;  %v2125_v30 = vsub.f32 0.0, %v2119_v8 }
 0x777   : > { %v2106_v33 = vpop.xlane.xlu1 %2105  ;;  %v2103_v61 = vpop.xlane.xlu0 %2102 }
 0x778   : > { %v2133_v44 = vmul.f32 1.442695, %v2126_v59  ;;  %v2131_v4 = vmul.f32 1.442695, %v2125_v30  ;;  %v2122_v54 = vadd.f32 %v2116_v24, %v2106_v33  ;;  %v2121_v9 = vadd.f32 %v2115_v50, %v2103_v61  ;;  %v2279_v59 = vld [vmem:[%s4315_s9 + $0x90] sm:$0xff] }
 0x77a   : > { %2552 = vpow2.f32 %v2133_v44  ;;  %v2128_v49 = vsub.f32 0.0, %v2122_v54  ;;  %v2127_v39 = vsub.f32 0.0, %v2121_v9 }
 0x77b   : > { %2554 = vpow2.f32 %v2131_v4  ;;  %v2112_v28 = vpop.xlane.xlu1 %2111  ;;  %v2109_v26 = vpop.xlane.xlu0 %2108 }
 0x77c   : > { %v2137_v3 = vmul.f32 1.442695, %v2128_v49  ;;  %v2135_v34 = vmul.f32 1.442695, %v2127_v39  ;;  %v2124_v10 = vadd.f32 %v2118_v56, %v2112_v28  ;;  %v2123_v41 = vadd.f32 %v2117_v42, %v2109_v26 }
 0x77e   : > { %2556 = vpow2.f32 %v2137_v3  ;;  %v2130_v36 = vsub.f32 0.0, %v2124_v10  ;;  %v2129_v17 = vsub.f32 0.0, %v2123_v41 }
 0x77f   : > { %2558 = vpow2.f32 %v2135_v34 }
 0x780   : > { %v2141_v11 = vmul.f32 1.442695, %v2130_v36  ;;  %v2139_v40 = vmul.f32 1.442695, %v2129_v17 }
 0x782   : > { %2560 = vpow2.f32 %v2141_v11 }
 0x783   : > { %2562 = vpow2.f32 %v2139_v40 }
 0x784   : > { %v2553_v21 = vpop.eup %2552 }
 0x785   : > { %v2555_v0 = vpop.eup %2554  ;;  %v2144_v58 = vadd.f32 1.0, %v2553_v21 }
 0x786   : > { %v2143_v20 = vadd.f32 1.0, %v2555_v0 }
 0x787   : > { %2564 = vrcp.f32 %v2144_v58 }
 0x788   : > { %v2557_v47 = vpop.eup %2556  ;;  %2566 = vrcp.f32 %v2143_v20 }
 0x789   : > { %v2559_v6 = vpop.eup %2558  ;;  %v2146_v15 = vadd.f32 1.0, %v2557_v47 }
 0x78a   : > { %v2145_v12 = vadd.f32 1.0, %v2559_v6 }
 0x78b   : > { %2568 = vrcp.f32 %v2146_v15 }
 0x78c   : > { %v2561_v32 = vpop.eup %2560  ;;  %2570 = vrcp.f32 %v2145_v12 }
 0x78d   : > { %v2563_v38 = vpop.eup %2562  ;;  %v2148_v7 = vadd.f32 1.0, %v2561_v32 }
 0x78e   : > { %v2147_v22 = vadd.f32 1.0, %v2563_v38 }
 0x78f   : > { %2572 = vrcp.f32 %v2148_v7 }
 0x790   : > { %2574 = vrcp.f32 %v2147_v22 }
 0x791   : > { %v2565_v18 = vpop.eup %2564 }
 0x792   : > { %v2567_v25 = vpop.eup %2566  ;;  %2168 = vperm.xlu1 %2538, %v2565_v18  }
 0x793   : > { %2163 = vperm.xlu0 %2537, %v2567_v25  }
 0x795   : > { %v2569_v29 = vpop.eup %2568 }
 0x796   : > { %v2571_v8 = vpop.eup %2570 }
 0x797   : > { %2178 = vperm.xlu0 %2537, %v2569_v29   ;;  %2173 = vperm.xlu1 %2538, %v2571_v8  }
 0x799   : > { %v2573_v24 = vpop.eup %2572 }
 0x79a   : > { %v2575_v50 = vpop.eup %2574 }
 0x79b   : > { %2188 = vperm.xlu0 %2537, %v2573_v24   ;;  %2183 = vperm.xlu1 %2538, %v2575_v50  }
 0x79f   : > { %2282 = vperm.xlu1 %2538, %v2279_v59  }
 0x811   : > { %v2169_v30 = vpop.permute.xlu1 %2168 }
 0x812   : > { %v2193_v33 = vmul.f32 %v2169_v30, %v2012_v45  ;;  %v2194_v61 = vmul.f32 %v2169_v30, %v2013_v16  ;;  %v2164_v44 = vpop.permute.xlu0 %2163 }
 0x813   : > { %v2191_v4 = vmul.f32 %v2164_v44, %v2010_v5  ;;  %v2192_v54 = vmul.f32 %v2164_v44, %v2011_v37 }
 0x815   : > { %v2459_v9 = vpack.c.bf16 %v2194_v61, %v2192_v54  ;;  %v2461_v56 = vpack.c.bf16 %v2193_v33, %v2191_v4 }
 0x816   : > { %v2174_v42 = vpop.permute.xlu1 %2173  ;;  %v2179_v49 = vpop.permute.xlu0 %2178 }
 0x817   : > { %v2195_v39 = vmul.f32 %v2174_v42, %v2014_v57  ;;  %v2196_v31 = vmul.f32 %v2174_v42, %v2015_v13  ;;  %v2197_v51 = vmul.f32 %v2179_v49, %v2016_v2  ;;  %v2198_v45 = vmul.f32 %v2179_v49, %v2017_v19  ;;  %2460 = vmatprep.subr.bf16.mxu1 %v2459_v9  ;;  %v4385_v19 = vld [vmem:[#allocation15_spill] sm:$0xff] }
 0x818   : > { %2462 = vmatpush1.bf16.msra.mxu1 %v2461_v56 }
 0x819   : > { %v2463_v16 = vpack.c.bf16 %v2198_v45, %v2196_v31  ;;  %v2465_v43 = vpack.c.bf16 %v2197_v51, %v2195_v39 }
 0x81a   : > { %v2184_v27 = vpop.permute.xlu1 %2183  ;;  %v2189_v5 = vpop.permute.xlu0 %2188 }
 0x81b   : > { %v2199_v35 = vmul.f32 %v2184_v27, %v2018_v46  ;;  %v2200_v52 = vmul.f32 %v2184_v27, %v2019_v48  ;;  %v2201_v57 = vmul.f32 %v2189_v5, %v2020_v14  ;;  %v2202_v13 = vmul.f32 %v2189_v5, %v2021_v23  ;;  %2464 = vmatprep.subr.bf16.mxu1 %v2463_v16  ;;  %v4386_v48 = vld [vmem:[#allocation14_spill] sm:$0xff] }
 0x81c   : > { %2466 = vmatpush1.bf16.msra.mxu1 %v2465_v43 }
 0x81d   : > { %v2467_v37 = vpack.c.bf16 %v2202_v13, %v2200_v52  ;;  %v2469_v60 = vpack.c.bf16 %v2201_v57, %v2199_v35 }
 0x81e   : > { %v2283_v46 = vpop.permute.xlu1 %2282 }
 0x81f   : > { %2468 = vmatprep.subr.bf16.mxu1 %v2467_v37 }
 0x820   : > { %2470 = vmatpush1.bf16.msra.mxu1 %v2469_v60 }
 0x823   : > { %2447 = vmatmul.mubr.msk.f32.vlgmr.msra.gmra.mrb[10].mxu1 %vm2204_vm14, %v2203_v63 }
 0x8f6   : > { %v2274_v2 = vpop.f32.mrb[10].mxu1 }
 0x8f7   : > { %v2275_v62 = vadd.f32 %v2274_v2, %v4385_v19  ;;  %v2276_v53 = vpop.f32.mrb[11].mxu1 }
 0x8f8   : > { %v2277_v55 = vadd.f32 %v2276_v53, %v4386_v48 }
 0x8f9   : > { %v2285_v1 = vadd.f32 %v2283_v46, %v2275_v62 }
 0x8fa   : > { %v2286_v14 = vadd.f32 %v2283_v46, %v2277_v55 }
 0x8fb   : > { %v2287_v23 = vmax.f32 %v2285_v1, 0.0 }
 0x8fc   : > { %v2288_v28 = vmax.f32 %v2286_v14, 0.0 }
 0x8fd   : > { %2289 = vst [vmem:[%s504_s22] sm:$0xff] %v2287_v23 }
 0x8fe   : > { %2290 = vst [vmem:[%s504_s22 + $0x8] sm:$0xff] %v2288_v28 }
 0x8ff   : > { %2617 = shalt.err (!%p2614_p7)
}
 0x900   : > { %s2618_s25 = scalar_lea.hbm %s4264_s27, 256  ;;  %s2622_s18 = scalar_lea.hbm %s4321_s15, 512 }
 0x901   : > { %p2619_p8 = scmp.ne.s32.totalorder %s4264_s27, %s2618_s25  ;;  %p2623_p1 = scmp.lt.u32.totalorder %s4264_s27, %s4321_s15 }
 0x902   : > { %p2624_p0 = scmp.lt.u32.totalorder %s2622_s18, %s2618_s25  ;;  %p2626_p6 = scmp.lt.u32.totalorder %s2618_s25, %s4264_s27 }
 0x903   : > { %p2620_p11 = pnand %p2619_p8, %p4387_p9 }
 0x904   : > { %p2625_p5 = por %p2624_p0, %p2623_p1 }
 0x905   : > { %p2621_p13 = pneg %p2620_p11 }
 0x906   : > { %p2627_p10 = por %p2626_p6, %p2625_p5 }
 0x908   : > { %p2628_p12 = pnand %p2627_p10, %p2621_p13 }
 0x90a   : > { %2631 = shalt.err (!%p2628_p12)
}
 0x90b   : > { %2479 = dma.vmem_to_hbm [thread:$0]  (%p4387_p9), %s4266_s16, 256, %s4264_s27, %s2292_s24  }
 0x90c PF: > { %s4388_s26 = sld [smem:[#allocation12_spill]]  ;;  %p2491_p2 = scmp.ge.s32.totalorder %s2670_s23, 2 }
 0x90d   : > { %s2318_s28 = sand.u32 1, %s2658_s20  }
 0x90e   : > { %s2319_s17 = scalar_lea.sflag [#allocation5], %s2318_s28 }
 0x912   : > { %p4389_p3 = scmp.ne.s32.totalorder %s4388_s26, 0 }
 0x914   : > { %p2486_p4 = pnand %p2491_p2, %p4389_p3 }
 0x916   : > { %2653 = dma.done.wait (!%p2486_p4), %s2319_s17, 256  }
 0x917   : > { %2655 = vsyncadd (!%p2486_p4), %s2319_s17, 4294967040  ;;  %s4390_s23 = sld [smem:[#allocation10_spill]]  ;;  %s4391_s25 = sld [smem:[#allocation9_spill]] }
 0x918   : > { %s4392_s22 = sld [smem:[#allocation11_spill]]  ;;  %s4393_s20 = smov %s2662_s21 }
 0x91d   : > { %p28_p7 = scmp.ge.s32.totalorder %s4390_s23, 4   ;;  %s4394_s21 = smov %s4391_s25 }
 0x91f   :  { %30 = sbr.rel (!%p28_p7) target bundleno = 7 (0x7), region = 136 }
 0x926   :  { %2324 = vsyncpa [#allocation4], 1 }
 0x927   :  { %2326 = vsyncpa [#allocation4 + $0x1], 1 }
 0x928   :  { %2327 = vsyncpa [#allocation5], 1 }
 0x929   :  { %2329 = vsyncpa [#allocation5 + $0x1], 1 }

</bundles_post_ra>
